<compile_context>
chip_gen: v6e
topology: v6e:2x2x1
jax: 0.10.0
libtpu: 0.0.40
codegen_flags: <defaults>
</compile_context>

<pallas_src>
import functools

import jax
import jax.numpy as jnp
from jax.experimental import pallas as pl
from jax.experimental.pallas import tpu as pltpu


# ----------------------------- fused Pallas kernel --------------------------


def _fused_rgan_d_kernel(num_layer, S, B, H, x_ref, *refs):
    """Fused num_layer-LSTM + Linear(S*H -> 1) + Sigmoid.

    x_ref      : (S*B, D_in)   flattened input sequence (row t*B+b)
    per layer  : wih (D_in_l, 4H), whh (H, 4H), bias (1, 4H)   [transposed]
    lin_w_ref  : (S, H)        final linear weight reshaped per-timestep
    lin_b_ref  : (1, 1)
    out_ref    : (B, 1)
    h_seq (scratch): (S*B, H)  intermediate layer output sequence
    """
    h_seq = refs[-1]          # VMEM scratch
    out_ref = refs[-2]
    lin_b_ref = refs[-3]
    lin_w_ref = refs[-4]
    layer_refs = refs[: 3 * num_layer]

    # Loop-invariant loads (hoisted once).
    lin_w = lin_w_ref[...]                       # (S, H)

    seq = x_ref[...]                             # (S*B, D_in) layer-0 input
    y = jnp.zeros((B, 1), jnp.float32)           # linear accumulator

    for layer in range(num_layer):
        wih = layer_refs[3 * layer][...]         # (D_in_l, 4H)
        whh = layer_refs[3 * layer + 1][...]     # (H, 4H)
        b = layer_refs[3 * layer + 2][...]       # (1, 4H) = b_ih + b_hh
        last = layer == num_layer - 1

        # Input projection for all timesteps at once (off the recurrent path):
        # (S*B, D_in_l) @ (D_in_l, 4H) + bias.
        gx = jnp.dot(seq, wih, preferred_element_type=jnp.float32) + b

        h = jnp.zeros((B, H), jnp.float32)
        c = jnp.zeros((B, H), jnp.float32)

        # Fully unrolled recurrence (S is static & small).
        for t in range(S):
            gates = gx[t * B:(t + 1) * B, :] + jnp.dot(
                h, whh, preferred_element_type=jnp.float32
            )                                            # (B, 4H)
            sig = jax.nn.sigmoid(gates)                  # full-tile EUP
            th = jnp.tanh(gates)                         # full-tile EUP
            i_g = sig[:, 0 * H:1 * H]
            f_g = sig[:, 1 * H:2 * H]
            g_g = th[:, 2 * H:3 * H]
            o_g = sig[:, 3 * H:4 * H]
            c = f_g * c + i_g * g_g
            h = o_g * jnp.tanh(c)

            if last:
                # Linear(S*H -> 1) folded in: y[b] += sum_h h[b,h]*W[t,h].
                y = y + jnp.sum(h * lin_w[t:t + 1, :], axis=-1, keepdims=True)
            else:
                h_seq[t * B:(t + 1) * B, :] = h

        if not last:
            seq = h_seq[...]                     # (S*B, H) next layer's input

    # TODO(synk): dropout treated as identity (eval mode).
    out_ref[...] = jax.nn.sigmoid(y + lin_b_ref[...]).astype(out_ref.dtype)


# ------------------------------ wrapper -------------------------------------


def _vmem_spec():
    return pl.BlockSpec(memory_space=pltpu.MemorySpace.VMEM)


@functools.partial(jax.jit, static_argnames=("seq_len", "hidden_sz", "num_layer"))
def rgan_d_forward(x, lstm_params, lin_w_sh, lin_b, *, seq_len, hidden_sz, num_layer):
    """x: (seq_len, batch, in_sz) -> (batch, 1)."""
    S, B, D_in = x.shape
    x2 = x.reshape(S * B, D_in)                  # row-major (t, b) flatten

    flat_params = []
    for (wih_t, whh_t, bias) in lstm_params:
        flat_params += [wih_t, whh_t, bias]

    n_in = 1 + 3 * num_layer + 2
    kernel = functools.partial(_fused_rgan_d_kernel, num_layer, S, B, hidden_sz)

    return pl.pallas_call(
        kernel,
        out_shape=jax.ShapeDtypeStruct((B, 1), jnp.float32),
        in_specs=[_vmem_spec()] * n_in,
        out_specs=_vmem_spec(),
        scratch_shapes=[pltpu.VMEM((S * B, hidden_sz), jnp.float32)],
    )(x2, *flat_params, lin_w_sh, lin_b)


# ----------------------- deterministic parameter init ----------------------


def init_params(key, seq_len, in_sz, hidden_sz, num_layer):
    """Shapes mirror nn.LSTM / nn.Linear in the PyTorch module."""
    keys = jax.random.split(key, num_layer * 4 + 2)
    k = 1.0 / jnp.sqrt(hidden_sz)

    lstm_params = []
    for layer in range(num_layer):
        d_in = in_sz if layer == 0 else hidden_sz
        kw = keys[layer * 4: layer * 4 + 4]
        w_ih = jax.random.uniform(kw[0], (4 * hidden_sz, d_in), jnp.float32, -k, k)
        w_hh = jax.random.uniform(kw[1], (4 * hidden_sz, hidden_sz), jnp.float32, -k, k)
        b_ih = jax.random.uniform(kw[2], (4 * hidden_sz,), jnp.float32, -k, k)
        b_hh = jax.random.uniform(kw[3], (4 * hidden_sz,), jnp.float32, -k, k)
        lstm_params.append(
            (w_ih.T, w_hh.T, (b_ih + b_hh).reshape(1, 4 * hidden_sz))
        )

    # Linear(hidden*seq_len -> 1), xavier_normal_ on the weight.
    fan_in = hidden_sz * seq_len
    fan_out = 1
    std = jnp.sqrt(2.0 / (fan_in + fan_out))
    lin_w = jax.random.normal(keys[-2], (1, fan_in), jnp.float32) * std
    kb = 1.0 / jnp.sqrt(fan_in)
    lin_b = jax.random.uniform(keys[-1], (1,), jnp.float32, -kb, kb)

    # Reshape linear weight to (S, H): column index of the flattened feature is
    # t*H + h  (matches out.transpose(0,1).reshape(B, S*H)).
    lin_w_sh = lin_w.reshape(seq_len, hidden_sz)
    return lstm_params, lin_w_sh, lin_b.reshape(1, 1)


# --------------------------------- main -------------------------------------


if __name__ == "__main__":
    seq_len, batch, in_sz, hidden_sz, num_layer = 8, 2, 4, 32, 2

    root = jax.random.PRNGKey(0)
    k_x, k_p = jax.random.split(root)

    x = jax.random.normal(k_x, (seq_len, batch, in_sz), jnp.float32)
    lstm_params, lin_w_sh, lin_b = init_params(
        k_p, seq_len, in_sz, hidden_sz, num_layer
    )

    out = rgan_d_forward(
        x, tuple(lstm_params), lin_w_sh, lin_b,
        seq_len=seq_len, hidden_sz=hidden_sz, num_layer=num_layer,
    )
    jax.block_until_ready(out)

    assert out.shape == (batch, 1)
    assert bool(jnp.all(jnp.isfinite(out)))
    assert bool(jnp.all((out >= 0.0) & (out <= 1.0)))
    print("KERNEL_OK")
</pallas_src>

<mosaic_0001>
module attributes {stable_mosaic.version = 11 : i64} {
  func.func @_fused_rgan_d_kernel(%arg0: memref<16x4xf32, #tpu.memory_space<vmem>>, %arg1: memref<4x128xf32, #tpu.memory_space<vmem>>, %arg2: memref<32x128xf32, #tpu.memory_space<vmem>>, %arg3: memref<1x128xf32, #tpu.memory_space<vmem>>, %arg4: memref<32x128xf32, #tpu.memory_space<vmem>>, %arg5: memref<32x128xf32, #tpu.memory_space<vmem>>, %arg6: memref<1x128xf32, #tpu.memory_space<vmem>>, %arg7: memref<8x32xf32, #tpu.memory_space<vmem>>, %arg8: memref<1x1xf32, #tpu.memory_space<vmem>>, %arg9: memref<2x1xf32, #tpu.memory_space<vmem>>, %arg10: memref<16x32xf32, #tpu.memory_space<vmem>>) attributes {dimension_semantics = [], scalar_prefetch = 0 : i64, scratch_operands = 1 : i64, tpu.core_type = #tpu.core_type<tc>} {
    %c0 = arith.constant 0 : index
    %c0_0 = arith.constant 0 : index
    %0 = vector.load %arg7[%c0, %c0_0] : memref<8x32xf32, #tpu.memory_space<vmem>>, vector<8x32xf32>
    %c0_1 = arith.constant 0 : index
    %c0_2 = arith.constant 0 : index
    %1 = vector.load %arg0[%c0_1, %c0_2] : memref<16x4xf32, #tpu.memory_space<vmem>>, vector<16x4xf32>
    %cst = arith.constant 0.000000e+00 : f32
    %2 = vector.broadcast %cst : f32 to vector<2x1xf32>
    %c0_3 = arith.constant 0 : index
    %c0_4 = arith.constant 0 : index
    %3 = vector.load %arg1[%c0_3, %c0_4] : memref<4x128xf32, #tpu.memory_space<vmem>>, vector<4x128xf32>
    %c0_5 = arith.constant 0 : index
    %c0_6 = arith.constant 0 : index
    %4 = vector.load %arg2[%c0_5, %c0_6] : memref<32x128xf32, #tpu.memory_space<vmem>>, vector<32x128xf32>
    %c0_7 = arith.constant 0 : index
    %c0_8 = arith.constant 0 : index
    %5 = vector.load %arg3[%c0_7, %c0_8] : memref<1x128xf32, #tpu.memory_space<vmem>>, vector<1x128xf32>
    %cst_9 = arith.constant dense<0.000000e+00> : vector<16x128xf32>
    %6 = tpu.matmul %1, %3, %cst_9 {dimension_numbers = #tpu.dot_dimension_numbers<[1], [0], [0], [1], [0, 0, 1, 1], [], []>} : vector<16x4xf32>, vector<4x128xf32>, vector<16x128xf32> -> vector<16x128xf32>
    %7 = vector.broadcast %5 : vector<1x128xf32> to vector<16x128xf32>
    %8 = arith.addf %6, %7 : vector<16x128xf32>
    %cst_10 = arith.constant 0.000000e+00 : f32
    %9 = vector.broadcast %cst_10 : f32 to vector<2x32xf32>
    %cst_11 = arith.constant 0.000000e+00 : f32
    %10 = vector.broadcast %cst_11 : f32 to vector<2x32xf32>
    %11 = vector.extract_strided_slice %8 {offsets = [0, 0], sizes = [2, 128], strides = [1, 1]} : vector<16x128xf32> to vector<2x128xf32>
    %cst_12 = arith.constant dense<0.000000e+00> : vector<2x128xf32>
    %12 = tpu.matmul %9, %4, %cst_12 {dimension_numbers = #tpu.dot_dimension_numbers<[1], [0], [0], [1], [0, 0, 1, 1], [], []>} : vector<2x32xf32>, vector<32x128xf32>, vector<2x128xf32> -> vector<2x128xf32>
    %13 = arith.addf %11, %12 : vector<2x128xf32>
    %14 = arith.negf %13 : vector<2x128xf32>
    %15 = math.exp %14 : vector<2x128xf32>
    %cst_13 = arith.constant 1.000000e+00 : f32
    %16 = vector.broadcast %cst_13 : f32 to vector<2x128xf32>
    %17 = arith.addf %16, %15 : vector<2x128xf32>
    %18 = arith.divf %16, %17 : vector<2x128xf32>
    %19 = math.tanh %13 : vector<2x128xf32>
    %20 = vector.extract_strided_slice %18 {offsets = [0, 0], sizes = [2, 32], strides = [1, 1]} : vector<2x128xf32> to vector<2x32xf32>
    %21 = vector.extract_strided_slice %18 {offsets = [0, 32], sizes = [2, 32], strides = [1, 1]} : vector<2x128xf32> to vector<2x32xf32>
    %22 = vector.extract_strided_slice %19 {offsets = [0, 64], sizes = [2, 32], strides = [1, 1]} : vector<2x128xf32> to vector<2x32xf32>
    %23 = vector.extract_strided_slice %18 {offsets = [0, 96], sizes = [2, 32], strides = [1, 1]} : vector<2x128xf32> to vector<2x32xf32>
    %24 = arith.mulf %21, %10 : vector<2x32xf32>
    %25 = arith.mulf %20, %22 : vector<2x32xf32>
    %26 = arith.addf %24, %25 : vector<2x32xf32>
    %27 = math.tanh %26 : vector<2x32xf32>
    %28 = arith.mulf %23, %27 : vector<2x32xf32>
    %c0_14 = arith.constant 0 : index
    %c0_15 = arith.constant 0 : index
    %29 = vector.load %arg10[%c0_14, %c0_15] : memref<16x32xf32, #tpu.memory_space<vmem>>, vector<2x32xf32>
    tpu.vector_store %arg10[%c0_14, %c0_15], %28 {strides = array<i32>} : memref<16x32xf32, #tpu.memory_space<vmem>>, vector<2x32xf32>,
    %30 = vector.extract_strided_slice %8 {offsets = [2, 0], sizes = [2, 128], strides = [1, 1]} : vector<16x128xf32> to vector<2x128xf32>
    %cst_16 = arith.constant dense<0.000000e+00> : vector<2x128xf32>
    %31 = tpu.matmul %28, %4, %cst_16 {dimension_numbers = #tpu.dot_dimension_numbers<[1], [0], [0], [1], [0, 0, 1, 1], [], []>} : vector<2x32xf32>, vector<32x128xf32>, vector<2x128xf32> -> vector<2x128xf32>
    %32 = arith.addf %30, %31 : vector<2x128xf32>
    %33 = arith.negf %32 : vector<2x128xf32>
    %34 = math.exp %33 : vector<2x128xf32>
    %cst_17 = arith.constant 1.000000e+00 : f32
    %35 = vector.broadcast %cst_17 : f32 to vector<2x128xf32>
    %36 = arith.addf %35, %34 : vector<2x128xf32>
    %37 = arith.divf %35, %36 : vector<2x128xf32>
    %38 = math.tanh %32 : vector<2x128xf32>
    %39 = vector.extract_strided_slice %37 {offsets = [0, 0], sizes = [2, 32], strides = [1, 1]} : vector<2x128xf32> to vector<2x32xf32>
    %40 = vector.extract_strided_slice %37 {offsets = [0, 32], sizes = [2, 32], strides = [1, 1]} : vector<2x128xf32> to vector<2x32xf32>
    %41 = vector.extract_strided_slice %38 {offsets = [0, 64], sizes = [2, 32], strides = [1, 1]} : vector<2x128xf32> to vector<2x32xf32>
    %42 = vector.extract_strided_slice %37 {offsets = [0, 96], sizes = [2, 32], strides = [1, 1]} : vector<2x128xf32> to vector<2x32xf32>
    %43 = arith.mulf %40, %26 : vector<2x32xf32>
    %44 = arith.mulf %39, %41 : vector<2x32xf32>
    %45 = arith.addf %43, %44 : vector<2x32xf32>
    %46 = math.tanh %45 : vector<2x32xf32>
    %47 = arith.mulf %42, %46 : vector<2x32xf32>
    %c2 = arith.constant 2 : index
    %c0_18 = arith.constant 0 : index
    %48 = vector.load %arg10[%c2, %c0_18] : memref<16x32xf32, #tpu.memory_space<vmem>>, vector<2x32xf32>
    tpu.vector_store %arg10[%c2, %c0_18], %47 {strides = array<i32>} : memref<16x32xf32, #tpu.memory_space<vmem>>, vector<2x32xf32>,
    %49 = vector.extract_strided_slice %8 {offsets = [4, 0], sizes = [2, 128], strides = [1, 1]} : vector<16x128xf32> to vector<2x128xf32>
    %cst_19 = arith.constant dense<0.000000e+00> : vector<2x128xf32>
    %50 = tpu.matmul %47, %4, %cst_19 {dimension_numbers = #tpu.dot_dimension_numbers<[1], [0], [0], [1], [0, 0, 1, 1], [], []>} : vector<2x32xf32>, vector<32x128xf32>, vector<2x128xf32> -> vector<2x128xf32>
    %51 = arith.addf %49, %50 : vector<2x128xf32>
    %52 = arith.negf %51 : vector<2x128xf32>
    %53 = math.exp %52 : vector<2x128xf32>
    %cst_20 = arith.constant 1.000000e+00 : f32
    %54 = vector.broadcast %cst_20 : f32 to vector<2x128xf32>
    %55 = arith.addf %54, %53 : vector<2x128xf32>
    %56 = arith.divf %54, %55 : vector<2x128xf32>
    %57 = math.tanh %51 : vector<2x128xf32>
    %58 = vector.extract_strided_slice %56 {offsets = [0, 0], sizes = [2, 32], strides = [1, 1]} : vector<2x128xf32> to vector<2x32xf32>
    %59 = vector.extract_strided_slice %56 {offsets = [0, 32], sizes = [2, 32], strides = [1, 1]} : vector<2x128xf32> to vector<2x32xf32>
    %60 = vector.extract_strided_slice %57 {offsets = [0, 64], sizes = [2, 32], strides = [1, 1]} : vector<2x128xf32> to vector<2x32xf32>
    %61 = vector.extract_strided_slice %56 {offsets = [0, 96], sizes = [2, 32], strides = [1, 1]} : vector<2x128xf32> to vector<2x32xf32>
    %62 = arith.mulf %59, %45 : vector<2x32xf32>
    %63 = arith.mulf %58, %60 : vector<2x32xf32>
    %64 = arith.addf %62, %63 : vector<2x32xf32>
    %65 = math.tanh %64 : vector<2x32xf32>
    %66 = arith.mulf %61, %65 : vector<2x32xf32>
    %c4 = arith.constant 4 : index
    %c0_21 = arith.constant 0 : index
    %67 = vector.load %arg10[%c4, %c0_21] : memref<16x32xf32, #tpu.memory_space<vmem>>, vector<2x32xf32>
    tpu.vector_store %arg10[%c4, %c0_21], %66 {strides = array<i32>} : memref<16x32xf32, #tpu.memory_space<vmem>>, vector<2x32xf32>,
    %68 = vector.extract_strided_slice %8 {offsets = [6, 0], sizes = [2, 128], strides = [1, 1]} : vector<16x128xf32> to vector<2x128xf32>
    %cst_22 = arith.constant dense<0.000000e+00> : vector<2x128xf32>
    %69 = tpu.matmul %66, %4, %cst_22 {dimension_numbers = #tpu.dot_dimension_numbers<[1], [0], [0], [1], [0, 0, 1, 1], [], []>} : vector<2x32xf32>, vector<32x128xf32>, vector<2x128xf32> -> vector<2x128xf32>
    %70 = arith.addf %68, %69 : vector<2x128xf32>
    %71 = arith.negf %70 : vector<2x128xf32>
    %72 = math.exp %71 : vector<2x128xf32>
    %cst_23 = arith.constant 1.000000e+00 : f32
    %73 = vector.broadcast %cst_23 : f32 to vector<2x128xf32>
    %74 = arith.addf %73, %72 : vector<2x128xf32>
    %75 = arith.divf %73, %74 : vector<2x128xf32>
    %76 = math.tanh %70 : vector<2x128xf32>
    %77 = vector.extract_strided_slice %75 {offsets = [0, 0], sizes = [2, 32], strides = [1, 1]} : vector<2x128xf32> to vector<2x32xf32>
    %78 = vector.extract_strided_slice %75 {offsets = [0, 32], sizes = [2, 32], strides = [1, 1]} : vector<2x128xf32> to vector<2x32xf32>
    %79 = vector.extract_strided_slice %76 {offsets = [0, 64], sizes = [2, 32], strides = [1, 1]} : vector<2x128xf32> to vector<2x32xf32>
    %80 = vector.extract_strided_slice %75 {offsets = [0, 96], sizes = [2, 32], strides = [1, 1]} : vector<2x128xf32> to vector<2x32xf32>
    %81 = arith.mulf %78, %64 : vector<2x32xf32>
    %82 = arith.mulf %77, %79 : vector<2x32xf32>
    %83 = arith.addf %81, %82 : vector<2x32xf32>
    %84 = math.tanh %83 : vector<2x32xf32>
    %85 = arith.mulf %80, %84 : vector<2x32xf32>
    %c6 = arith.constant 6 : index
    %c0_24 = arith.constant 0 : index
    %86 = vector.load %arg10[%c6, %c0_24] : memref<16x32xf32, #tpu.memory_space<vmem>>, vector<2x32xf32>
    tpu.vector_store %arg10[%c6, %c0_24], %85 {strides = array<i32>} : memref<16x32xf32, #tpu.memory_space<vmem>>, vector<2x32xf32>,
    %87 = vector.extract_strided_slice %8 {offsets = [8, 0], sizes = [2, 128], strides = [1, 1]} : vector<16x128xf32> to vector<2x128xf32>
    %cst_25 = arith.constant dense<0.000000e+00> : vector<2x128xf32>
    %88 = tpu.matmul %85, %4, %cst_25 {dimension_numbers = #tpu.dot_dimension_numbers<[1], [0], [0], [1], [0, 0, 1, 1], [], []>} : vector<2x32xf32>, vector<32x128xf32>, vector<2x128xf32> -> vector<2x128xf32>
    %89 = arith.addf %87, %88 : vector<2x128xf32>
    %90 = arith.negf %89 : vector<2x128xf32>
    %91 = math.exp %90 : vector<2x128xf32>
    %cst_26 = arith.constant 1.000000e+00 : f32
    %92 = vector.broadcast %cst_26 : f32 to vector<2x128xf32>
    %93 = arith.addf %92, %91 : vector<2x128xf32>
    %94 = arith.divf %92, %93 : vector<2x128xf32>
    %95 = math.tanh %89 : vector<2x128xf32>
    %96 = vector.extract_strided_slice %94 {offsets = [0, 0], sizes = [2, 32], strides = [1, 1]} : vector<2x128xf32> to vector<2x32xf32>
    %97 = vector.extract_strided_slice %94 {offsets = [0, 32], sizes = [2, 32], strides = [1, 1]} : vector<2x128xf32> to vector<2x32xf32>
    %98 = vector.extract_strided_slice %95 {offsets = [0, 64], sizes = [2, 32], strides = [1, 1]} : vector<2x128xf32> to vector<2x32xf32>
    %99 = vector.extract_strided_slice %94 {offsets = [0, 96], sizes = [2, 32], strides = [1, 1]} : vector<2x128xf32> to vector<2x32xf32>
    %100 = arith.mulf %97, %83 : vector<2x32xf32>
    %101 = arith.mulf %96, %98 : vector<2x32xf32>
    %102 = arith.addf %100, %101 : vector<2x32xf32>
    %103 = math.tanh %102 : vector<2x32xf32>
    %104 = arith.mulf %99, %103 : vector<2x32xf32>
    %c8 = arith.constant 8 : index
    %c0_27 = arith.constant 0 : index
    %105 = vector.load %arg10[%c8, %c0_27] : memref<16x32xf32, #tpu.memory_space<vmem>>, vector<2x32xf32>
    tpu.vector_store %arg10[%c8, %c0_27], %104 {strides = array<i32>} : memref<16x32xf32, #tpu.memory_space<vmem>>, vector<2x32xf32>,
    %106 = vector.extract_strided_slice %8 {offsets = [10, 0], sizes = [2, 128], strides = [1, 1]} : vector<16x128xf32> to vector<2x128xf32>
    %cst_28 = arith.constant dense<0.000000e+00> : vector<2x128xf32>
    %107 = tpu.matmul %104, %4, %cst_28 {dimension_numbers = #tpu.dot_dimension_numbers<[1], [0], [0], [1], [0, 0, 1, 1], [], []>} : vector<2x32xf32>, vector<32x128xf32>, vector<2x128xf32> -> vector<2x128xf32>
    %108 = arith.addf %106, %107 : vector<2x128xf32>
    %109 = arith.negf %108 : vector<2x128xf32>
    %110 = math.exp %109 : vector<2x128xf32>
    %cst_29 = arith.constant 1.000000e+00 : f32
    %111 = vector.broadcast %cst_29 : f32 to vector<2x128xf32>
    %112 = arith.addf %111, %110 : vector<2x128xf32>
    %113 = arith.divf %111, %112 : vector<2x128xf32>
    %114 = math.tanh %108 : vector<2x128xf32>
    %115 = vector.extract_strided_slice %113 {offsets = [0, 0], sizes = [2, 32], strides = [1, 1]} : vector<2x128xf32> to vector<2x32xf32>
    %116 = vector.extract_strided_slice %113 {offsets = [0, 32], sizes = [2, 32], strides = [1, 1]} : vector<2x128xf32> to vector<2x32xf32>
    %117 = vector.extract_strided_slice %114 {offsets = [0, 64], sizes = [2, 32], strides = [1, 1]} : vector<2x128xf32> to vector<2x32xf32>
    %118 = vector.extract_strided_slice %113 {offsets = [0, 96], sizes = [2, 32], strides = [1, 1]} : vector<2x128xf32> to vector<2x32xf32>
    %119 = arith.mulf %116, %102 : vector<2x32xf32>
    %120 = arith.mulf %115, %117 : vector<2x32xf32>
    %121 = arith.addf %119, %120 : vector<2x32xf32>
    %122 = math.tanh %121 : vector<2x32xf32>
    %123 = arith.mulf %118, %122 : vector<2x32xf32>
    %c10 = arith.constant 10 : index
    %c0_30 = arith.constant 0 : index
    %124 = vector.load %arg10[%c10, %c0_30] : memref<16x32xf32, #tpu.memory_space<vmem>>, vector<2x32xf32>
    tpu.vector_store %arg10[%c10, %c0_30], %123 {strides = array<i32>} : memref<16x32xf32, #tpu.memory_space<vmem>>, vector<2x32xf32>,
    %125 = vector.extract_strided_slice %8 {offsets = [12, 0], sizes = [2, 128], strides = [1, 1]} : vector<16x128xf32> to vector<2x128xf32>
    %cst_31 = arith.constant dense<0.000000e+00> : vector<2x128xf32>
    %126 = tpu.matmul %123, %4, %cst_31 {dimension_numbers = #tpu.dot_dimension_numbers<[1], [0], [0], [1], [0, 0, 1, 1], [], []>} : vector<2x32xf32>, vector<32x128xf32>, vector<2x128xf32> -> vector<2x128xf32>
    %127 = arith.addf %125, %126 : vector<2x128xf32>
    %128 = arith.negf %127 : vector<2x128xf32>
    %129 = math.exp %128 : vector<2x128xf32>
    %cst_32 = arith.constant 1.000000e+00 : f32
    %130 = vector.broadcast %cst_32 : f32 to vector<2x128xf32>
    %131 = arith.addf %130, %129 : vector<2x128xf32>
    %132 = arith.divf %130, %131 : vector<2x128xf32>
    %133 = math.tanh %127 : vector<2x128xf32>
    %134 = vector.extract_strided_slice %132 {offsets = [0, 0], sizes = [2, 32], strides = [1, 1]} : vector<2x128xf32> to vector<2x32xf32>
    %135 = vector.extract_strided_slice %132 {offsets = [0, 32], sizes = [2, 32], strides = [1, 1]} : vector<2x128xf32> to vector<2x32xf32>
    %136 = vector.extract_strided_slice %133 {offsets = [0, 64], sizes = [2, 32], strides = [1, 1]} : vector<2x128xf32> to vector<2x32xf32>
    %137 = vector.extract_strided_slice %132 {offsets = [0, 96], sizes = [2, 32], strides = [1, 1]} : vector<2x128xf32> to vector<2x32xf32>
    %138 = arith.mulf %135, %121 : vector<2x32xf32>
    %139 = arith.mulf %134, %136 : vector<2x32xf32>
    %140 = arith.addf %138, %139 : vector<2x32xf32>
    %141 = math.tanh %140 : vector<2x32xf32>
    %142 = arith.mulf %137, %141 : vector<2x32xf32>
    %c12 = arith.constant 12 : index
    %c0_33 = arith.constant 0 : index
    %143 = vector.load %arg10[%c12, %c0_33] : memref<16x32xf32, #tpu.memory_space<vmem>>, vector<2x32xf32>
    tpu.vector_store %arg10[%c12, %c0_33], %142 {strides = array<i32>} : memref<16x32xf32, #tpu.memory_space<vmem>>, vector<2x32xf32>,
    %144 = vector.extract_strided_slice %8 {offsets = [14, 0], sizes = [2, 128], strides = [1, 1]} : vector<16x128xf32> to vector<2x128xf32>
    %cst_34 = arith.constant dense<0.000000e+00> : vector<2x128xf32>
    %145 = tpu.matmul %142, %4, %cst_34 {dimension_numbers = #tpu.dot_dimension_numbers<[1], [0], [0], [1], [0, 0, 1, 1], [], []>} : vector<2x32xf32>, vector<32x128xf32>, vector<2x128xf32> -> vector<2x128xf32>
    %146 = arith.addf %144, %145 : vector<2x128xf32>
    %147 = arith.negf %146 : vector<2x128xf32>
    %148 = math.exp %147 : vector<2x128xf32>
    %cst_35 = arith.constant 1.000000e+00 : f32
    %149 = vector.broadcast %cst_35 : f32 to vector<2x128xf32>
    %150 = arith.addf %149, %148 : vector<2x128xf32>
    %151 = arith.divf %149, %150 : vector<2x128xf32>
    %152 = math.tanh %146 : vector<2x128xf32>
    %153 = vector.extract_strided_slice %151 {offsets = [0, 0], sizes = [2, 32], strides = [1, 1]} : vector<2x128xf32> to vector<2x32xf32>
    %154 = vector.extract_strided_slice %151 {offsets = [0, 32], sizes = [2, 32], strides = [1, 1]} : vector<2x128xf32> to vector<2x32xf32>
    %155 = vector.extract_strided_slice %152 {offsets = [0, 64], sizes = [2, 32], strides = [1, 1]} : vector<2x128xf32> to vector<2x32xf32>
    %156 = vector.extract_strided_slice %151 {offsets = [0, 96], sizes = [2, 32], strides = [1, 1]} : vector<2x128xf32> to vector<2x32xf32>
    %157 = arith.mulf %154, %140 : vector<2x32xf32>
    %158 = arith.mulf %153, %155 : vector<2x32xf32>
    %159 = arith.addf %157, %158 : vector<2x32xf32>
    %160 = math.tanh %159 : vector<2x32xf32>
    %161 = arith.mulf %156, %160 : vector<2x32xf32>
    %c14 = arith.constant 14 : index
    %c0_36 = arith.constant 0 : index
    %162 = vector.load %arg10[%c14, %c0_36] : memref<16x32xf32, #tpu.memory_space<vmem>>, vector<2x32xf32>
    tpu.vector_store %arg10[%c14, %c0_36], %161 {strides = array<i32>} : memref<16x32xf32, #tpu.memory_space<vmem>>, vector<2x32xf32>,
    %c0_37 = arith.constant 0 : index
    %c0_38 = arith.constant 0 : index
    %163 = vector.load %arg10[%c0_37, %c0_38] : memref<16x32xf32, #tpu.memory_space<vmem>>, vector<16x32xf32>
    %c0_39 = arith.constant 0 : index
    %c0_40 = arith.constant 0 : index
    %164 = vector.load %arg4[%c0_39, %c0_40] : memref<32x128xf32, #tpu.memory_space<vmem>>, vector<32x128xf32>
    %c0_41 = arith.constant 0 : index
    %c0_42 = arith.constant 0 : index
    %165 = vector.load %arg5[%c0_41, %c0_42] : memref<32x128xf32, #tpu.memory_space<vmem>>, vector<32x128xf32>
    %c0_43 = arith.constant 0 : index
    %c0_44 = arith.constant 0 : index
    %166 = vector.load %arg6[%c0_43, %c0_44] : memref<1x128xf32, #tpu.memory_space<vmem>>, vector<1x128xf32>
    %cst_45 = arith.constant dense<0.000000e+00> : vector<16x128xf32>
    %167 = tpu.matmul %163, %164, %cst_45 {dimension_numbers = #tpu.dot_dimension_numbers<[1], [0], [0], [1], [0, 0, 1, 1], [], []>} : vector<16x32xf32>, vector<32x128xf32>, vector<16x128xf32> -> vector<16x128xf32>
    %168 = vector.broadcast %166 : vector<1x128xf32> to vector<16x128xf32>
    %169 = arith.addf %167, %168 : vector<16x128xf32>
    %cst_46 = arith.constant 0.000000e+00 : f32
    %170 = vector.broadcast %cst_46 : f32 to vector<2x32xf32>
    %cst_47 = arith.constant 0.000000e+00 : f32
    %171 = vector.broadcast %cst_47 : f32 to vector<2x32xf32>
    %172 = vector.extract_strided_slice %169 {offsets = [0, 0], sizes = [2, 128], strides = [1, 1]} : vector<16x128xf32> to vector<2x128xf32>
    %cst_48 = arith.constant dense<0.000000e+00> : vector<2x128xf32>
    %173 = tpu.matmul %170, %165, %cst_48 {dimension_numbers = #tpu.dot_dimension_numbers<[1], [0], [0], [1], [0, 0, 1, 1], [], []>} : vector<2x32xf32>, vector<32x128xf32>, vector<2x128xf32> -> vector<2x128xf32>
    %174 = arith.addf %172, %173 : vector<2x128xf32>
    %175 = arith.negf %174 : vector<2x128xf32>
    %176 = math.exp %175 : vector<2x128xf32>
    %cst_49 = arith.constant 1.000000e+00 : f32
    %177 = vector.broadcast %cst_49 : f32 to vector<2x128xf32>
    %178 = arith.addf %177, %176 : vector<2x128xf32>
    %179 = arith.divf %177, %178 : vector<2x128xf32>
    %180 = math.tanh %174 : vector<2x128xf32>
    %181 = vector.extract_strided_slice %179 {offsets = [0, 0], sizes = [2, 32], strides = [1, 1]} : vector<2x128xf32> to vector<2x32xf32>
    %182 = vector.extract_strided_slice %179 {offsets = [0, 32], sizes = [2, 32], strides = [1, 1]} : vector<2x128xf32> to vector<2x32xf32>
    %183 = vector.extract_strided_slice %180 {offsets = [0, 64], sizes = [2, 32], strides = [1, 1]} : vector<2x128xf32> to vector<2x32xf32>
    %184 = vector.extract_strided_slice %179 {offsets = [0, 96], sizes = [2, 32], strides = [1, 1]} : vector<2x128xf32> to vector<2x32xf32>
    %185 = arith.mulf %182, %171 : vector<2x32xf32>
    %186 = arith.mulf %181, %183 : vector<2x32xf32>
    %187 = arith.addf %185, %186 : vector<2x32xf32>
    %188 = math.tanh %187 : vector<2x32xf32>
    %189 = arith.mulf %184, %188 : vector<2x32xf32>
    %190 = vector.extract_strided_slice %0 {offsets = [0, 0], sizes = [1, 32], strides = [1, 1]} : vector<8x32xf32> to vector<1x32xf32>
    %191 = vector.broadcast %190 : vector<1x32xf32> to vector<2x32xf32>
    %192 = arith.mulf %189, %191 : vector<2x32xf32>
    %cst_50 = arith.constant dense<0.000000e+00> : vector<2xf32>
    %193 = vector.multi_reduction <add>, %192, %cst_50 [1] : vector<2x32xf32> to vector<2xf32>
    %194 = vector.shape_cast %193 : vector<2xf32> to vector<2x1xf32>
    %195 = arith.addf %2, %194 : vector<2x1xf32>
    %196 = vector.extract_strided_slice %169 {offsets = [2, 0], sizes = [2, 128], strides = [1, 1]} : vector<16x128xf32> to vector<2x128xf32>
    %cst_51 = arith.constant dense<0.000000e+00> : vector<2x128xf32>
    %197 = tpu.matmul %189, %165, %cst_51 {dimension_numbers = #tpu.dot_dimension_numbers<[1], [0], [0], [1], [0, 0, 1, 1], [], []>} : vector<2x32xf32>, vector<32x128xf32>, vector<2x128xf32> -> vector<2x128xf32>
    %198 = arith.addf %196, %197 : vector<2x128xf32>
    %199 = arith.negf %198 : vector<2x128xf32>
    %200 = math.exp %199 : vector<2x128xf32>
    %cst_52 = arith.constant 1.000000e+00 : f32
    %201 = vector.broadcast %cst_52 : f32 to vector<2x128xf32>
    %202 = arith.addf %201, %200 : vector<2x128xf32>
    %203 = arith.divf %201, %202 : vector<2x128xf32>
    %204 = math.tanh %198 : vector<2x128xf32>
    %205 = vector.extract_strided_slice %203 {offsets = [0, 0], sizes = [2, 32], strides = [1, 1]} : vector<2x128xf32> to vector<2x32xf32>
    %206 = vector.extract_strided_slice %203 {offsets = [0, 32], sizes = [2, 32], strides = [1, 1]} : vector<2x128xf32> to vector<2x32xf32>
    %207 = vector.extract_strided_slice %204 {offsets = [0, 64], sizes = [2, 32], strides = [1, 1]} : vector<2x128xf32> to vector<2x32xf32>
    %208 = vector.extract_strided_slice %203 {offsets = [0, 96], sizes = [2, 32], strides = [1, 1]} : vector<2x128xf32> to vector<2x32xf32>
    %209 = arith.mulf %206, %187 : vector<2x32xf32>
    %210 = arith.mulf %205, %207 : vector<2x32xf32>
    %211 = arith.addf %209, %210 : vector<2x32xf32>
    %212 = math.tanh %211 : vector<2x32xf32>
    %213 = arith.mulf %208, %212 : vector<2x32xf32>
    %214 = vector.extract_strided_slice %0 {offsets = [1, 0], sizes = [1, 32], strides = [1, 1]} : vector<8x32xf32> to vector<1x32xf32>
    %215 = vector.broadcast %214 : vector<1x32xf32> to vector<2x32xf32>
    %216 = arith.mulf %213, %215 : vector<2x32xf32>
    %cst_53 = arith.constant dense<0.000000e+00> : vector<2xf32>
    %217 = vector.multi_reduction <add>, %216, %cst_53 [1] : vector<2x32xf32> to vector<2xf32>
    %218 = vector.shape_cast %217 : vector<2xf32> to vector<2x1xf32>
    %219 = arith.addf %195, %218 : vector<2x1xf32>
    %220 = vector.extract_strided_slice %169 {offsets = [4, 0], sizes = [2, 128], strides = [1, 1]} : vector<16x128xf32> to vector<2x128xf32>
    %cst_54 = arith.constant dense<0.000000e+00> : vector<2x128xf32>
    %221 = tpu.matmul %213, %165, %cst_54 {dimension_numbers = #tpu.dot_dimension_numbers<[1], [0], [0], [1], [0, 0, 1, 1], [], []>} : vector<2x32xf32>, vector<32x128xf32>, vector<2x128xf32> -> vector<2x128xf32>
    %222 = arith.addf %220, %221 : vector<2x128xf32>
    %223 = arith.negf %222 : vector<2x128xf32>
    %224 = math.exp %223 : vector<2x128xf32>
    %cst_55 = arith.constant 1.000000e+00 : f32
    %225 = vector.broadcast %cst_55 : f32 to vector<2x128xf32>
    %226 = arith.addf %225, %224 : vector<2x128xf32>
    %227 = arith.divf %225, %226 : vector<2x128xf32>
    %228 = math.tanh %222 : vector<2x128xf32>
    %229 = vector.extract_strided_slice %227 {offsets = [0, 0], sizes = [2, 32], strides = [1, 1]} : vector<2x128xf32> to vector<2x32xf32>
    %230 = vector.extract_strided_slice %227 {offsets = [0, 32], sizes = [2, 32], strides = [1, 1]} : vector<2x128xf32> to vector<2x32xf32>
    %231 = vector.extract_strided_slice %228 {offsets = [0, 64], sizes = [2, 32], strides = [1, 1]} : vector<2x128xf32> to vector<2x32xf32>
    %232 = vector.extract_strided_slice %227 {offsets = [0, 96], sizes = [2, 32], strides = [1, 1]} : vector<2x128xf32> to vector<2x32xf32>
    %233 = arith.mulf %230, %211 : vector<2x32xf32>
    %234 = arith.mulf %229, %231 : vector<2x32xf32>
    %235 = arith.addf %233, %234 : vector<2x32xf32>
    %236 = math.tanh %235 : vector<2x32xf32>
    %237 = arith.mulf %232, %236 : vector<2x32xf32>
    %238 = vector.extract_strided_slice %0 {offsets = [2, 0], sizes = [1, 32], strides = [1, 1]} : vector<8x32xf32> to vector<1x32xf32>
    %239 = vector.broadcast %238 : vector<1x32xf32> to vector<2x32xf32>
    %240 = arith.mulf %237, %239 : vector<2x32xf32>
    %cst_56 = arith.constant dense<0.000000e+00> : vector<2xf32>
    %241 = vector.multi_reduction <add>, %240, %cst_56 [1] : vector<2x32xf32> to vector<2xf32>
    %242 = vector.shape_cast %241 : vector<2xf32> to vector<2x1xf32>
    %243 = arith.addf %219, %242 : vector<2x1xf32>
    %244 = vector.extract_strided_slice %169 {offsets = [6, 0], sizes = [2, 128], strides = [1, 1]} : vector<16x128xf32> to vector<2x128xf32>
    %cst_57 = arith.constant dense<0.000000e+00> : vector<2x128xf32>
    %245 = tpu.matmul %237, %165, %cst_57 {dimension_numbers = #tpu.dot_dimension_numbers<[1], [0], [0], [1], [0, 0, 1, 1], [], []>} : vector<2x32xf32>, vector<32x128xf32>, vector<2x128xf32> -> vector<2x128xf32>
    %246 = arith.addf %244, %245 : vector<2x128xf32>
    %247 = arith.negf %246 : vector<2x128xf32>
    %248 = math.exp %247 : vector<2x128xf32>
    %cst_58 = arith.constant 1.000000e+00 : f32
    %249 = vector.broadcast %cst_58 : f32 to vector<2x128xf32>
    %250 = arith.addf %249, %248 : vector<2x128xf32>
    %251 = arith.divf %249, %250 : vector<2x128xf32>
    %252 = math.tanh %246 : vector<2x128xf32>
    %253 = vector.extract_strided_slice %251 {offsets = [0, 0], sizes = [2, 32], strides = [1, 1]} : vector<2x128xf32> to vector<2x32xf32>
    %254 = vector.extract_strided_slice %251 {offsets = [0, 32], sizes = [2, 32], strides = [1, 1]} : vector<2x128xf32> to vector<2x32xf32>
    %255 = vector.extract_strided_slice %252 {offsets = [0, 64], sizes = [2, 32], strides = [1, 1]} : vector<2x128xf32> to vector<2x32xf32>
    %256 = vector.extract_strided_slice %251 {offsets = [0, 96], sizes = [2, 32], strides = [1, 1]} : vector<2x128xf32> to vector<2x32xf32>
    %257 = arith.mulf %254, %235 : vector<2x32xf32>
    %258 = arith.mulf %253, %255 : vector<2x32xf32>
    %259 = arith.addf %257, %258 : vector<2x32xf32>
    %260 = math.tanh %259 : vector<2x32xf32>
    %261 = arith.mulf %256, %260 : vector<2x32xf32>
    %262 = vector.extract_strided_slice %0 {offsets = [3, 0], sizes = [1, 32], strides = [1, 1]} : vector<8x32xf32> to vector<1x32xf32>
    %263 = vector.broadcast %262 : vector<1x32xf32> to vector<2x32xf32>
    %264 = arith.mulf %261, %263 : vector<2x32xf32>
    %cst_59 = arith.constant dense<0.000000e+00> : vector<2xf32>
    %265 = vector.multi_reduction <add>, %264, %cst_59 [1] : vector<2x32xf32> to vector<2xf32>
    %266 = vector.shape_cast %265 : vector<2xf32> to vector<2x1xf32>
    %267 = arith.addf %243, %266 : vector<2x1xf32>
    %268 = vector.extract_strided_slice %169 {offsets = [8, 0], sizes = [2, 128], strides = [1, 1]} : vector<16x128xf32> to vector<2x128xf32>
    %cst_60 = arith.constant dense<0.000000e+00> : vector<2x128xf32>
    %269 = tpu.matmul %261, %165, %cst_60 {dimension_numbers = #tpu.dot_dimension_numbers<[1], [0], [0], [1], [0, 0, 1, 1], [], []>} : vector<2x32xf32>, vector<32x128xf32>, vector<2x128xf32> -> vector<2x128xf32>
    %270 = arith.addf %268, %269 : vector<2x128xf32>
    %271 = arith.negf %270 : vector<2x128xf32>
    %272 = math.exp %271 : vector<2x128xf32>
    %cst_61 = arith.constant 1.000000e+00 : f32
    %273 = vector.broadcast %cst_61 : f32 to vector<2x128xf32>
    %274 = arith.addf %273, %272 : vector<2x128xf32>
    %275 = arith.divf %273, %274 : vector<2x128xf32>
    %276 = math.tanh %270 : vector<2x128xf32>
    %277 = vector.extract_strided_slice %275 {offsets = [0, 0], sizes = [2, 32], strides = [1, 1]} : vector<2x128xf32> to vector<2x32xf32>
    %278 = vector.extract_strided_slice %275 {offsets = [0, 32], sizes = [2, 32], strides = [1, 1]} : vector<2x128xf32> to vector<2x32xf32>
    %279 = vector.extract_strided_slice %276 {offsets = [0, 64], sizes = [2, 32], strides = [1, 1]} : vector<2x128xf32> to vector<2x32xf32>
    %280 = vector.extract_strided_slice %275 {offsets = [0, 96], sizes = [2, 32], strides = [1, 1]} : vector<2x128xf32> to vector<2x32xf32>
    %281 = arith.mulf %278, %259 : vector<2x32xf32>
    %282 = arith.mulf %277, %279 : vector<2x32xf32>
    %283 = arith.addf %281, %282 : vector<2x32xf32>
    %284 = math.tanh %283 : vector<2x32xf32>
    %285 = arith.mulf %280, %284 : vector<2x32xf32>
    %286 = vector.extract_strided_slice %0 {offsets = [4, 0], sizes = [1, 32], strides = [1, 1]} : vector<8x32xf32> to vector<1x32xf32>
    %287 = vector.broadcast %286 : vector<1x32xf32> to vector<2x32xf32>
    %288 = arith.mulf %285, %287 : vector<2x32xf32>
    %cst_62 = arith.constant dense<0.000000e+00> : vector<2xf32>
    %289 = vector.multi_reduction <add>, %288, %cst_62 [1] : vector<2x32xf32> to vector<2xf32>
    %290 = vector.shape_cast %289 : vector<2xf32> to vector<2x1xf32>
    %291 = arith.addf %267, %290 : vector<2x1xf32>
    %292 = vector.extract_strided_slice %169 {offsets = [10, 0], sizes = [2, 128], strides = [1, 1]} : vector<16x128xf32> to vector<2x128xf32>
    %cst_63 = arith.constant dense<0.000000e+00> : vector<2x128xf32>
    %293 = tpu.matmul %285, %165, %cst_63 {dimension_numbers = #tpu.dot_dimension_numbers<[1], [0], [0], [1], [0, 0, 1, 1], [], []>} : vector<2x32xf32>, vector<32x128xf32>, vector<2x128xf32> -> vector<2x128xf32>
    %294 = arith.addf %292, %293 : vector<2x128xf32>
    %295 = arith.negf %294 : vector<2x128xf32>
    %296 = math.exp %295 : vector<2x128xf32>
    %cst_64 = arith.constant 1.000000e+00 : f32
    %297 = vector.broadcast %cst_64 : f32 to vector<2x128xf32>
    %298 = arith.addf %297, %296 : vector<2x128xf32>
    %299 = arith.divf %297, %298 : vector<2x128xf32>
    %300 = math.tanh %294 : vector<2x128xf32>
    %301 = vector.extract_strided_slice %299 {offsets = [0, 0], sizes = [2, 32], strides = [1, 1]} : vector<2x128xf32> to vector<2x32xf32>
    %302 = vector.extract_strided_slice %299 {offsets = [0, 32], sizes = [2, 32], strides = [1, 1]} : vector<2x128xf32> to vector<2x32xf32>
    %303 = vector.extract_strided_slice %300 {offsets = [0, 64], sizes = [2, 32], strides = [1, 1]} : vector<2x128xf32> to vector<2x32xf32>
    %304 = vector.extract_strided_slice %299 {offsets = [0, 96], sizes = [2, 32], strides = [1, 1]} : vector<2x128xf32> to vector<2x32xf32>
    %305 = arith.mulf %302, %283 : vector<2x32xf32>
    %306 = arith.mulf %301, %303 : vector<2x32xf32>
    %307 = arith.addf %305, %306 : vector<2x32xf32>
    %308 = math.tanh %307 : vector<2x32xf32>
    %309 = arith.mulf %304, %308 : vector<2x32xf32>
    %310 = vector.extract_strided_slice %0 {offsets = [5, 0], sizes = [1, 32], strides = [1, 1]} : vector<8x32xf32> to vector<1x32xf32>
    %311 = vector.broadcast %310 : vector<1x32xf32> to vector<2x32xf32>
    %312 = arith.mulf %309, %311 : vector<2x32xf32>
    %cst_65 = arith.constant dense<0.000000e+00> : vector<2xf32>
    %313 = vector.multi_reduction <add>, %312, %cst_65 [1] : vector<2x32xf32> to vector<2xf32>
    %314 = vector.shape_cast %313 : vector<2xf32> to vector<2x1xf32>
    %315 = arith.addf %291, %314 : vector<2x1xf32>
    %316 = vector.extract_strided_slice %169 {offsets = [12, 0], sizes = [2, 128], strides = [1, 1]} : vector<16x128xf32> to vector<2x128xf32>
    %cst_66 = arith.constant dense<0.000000e+00> : vector<2x128xf32>
    %317 = tpu.matmul %309, %165, %cst_66 {dimension_numbers = #tpu.dot_dimension_numbers<[1], [0], [0], [1], [0, 0, 1, 1], [], []>} : vector<2x32xf32>, vector<32x128xf32>, vector<2x128xf32> -> vector<2x128xf32>
    %318 = arith.addf %316, %317 : vector<2x128xf32>
    %319 = arith.negf %318 : vector<2x128xf32>
    %320 = math.exp %319 : vector<2x128xf32>
    %cst_67 = arith.constant 1.000000e+00 : f32
    %321 = vector.broadcast %cst_67 : f32 to vector<2x128xf32>
    %322 = arith.addf %321, %320 : vector<2x128xf32>
    %323 = arith.divf %321, %322 : vector<2x128xf32>
    %324 = math.tanh %318 : vector<2x128xf32>
    %325 = vector.extract_strided_slice %323 {offsets = [0, 0], sizes = [2, 32], strides = [1, 1]} : vector<2x128xf32> to vector<2x32xf32>
    %326 = vector.extract_strided_slice %323 {offsets = [0, 32], sizes = [2, 32], strides = [1, 1]} : vector<2x128xf32> to vector<2x32xf32>
    %327 = vector.extract_strided_slice %324 {offsets = [0, 64], sizes = [2, 32], strides = [1, 1]} : vector<2x128xf32> to vector<2x32xf32>
    %328 = vector.extract_strided_slice %323 {offsets = [0, 96], sizes = [2, 32], strides = [1, 1]} : vector<2x128xf32> to vector<2x32xf32>
    %329 = arith.mulf %326, %307 : vector<2x32xf32>
    %330 = arith.mulf %325, %327 : vector<2x32xf32>
    %331 = arith.addf %329, %330 : vector<2x32xf32>
    %332 = math.tanh %331 : vector<2x32xf32>
    %333 = arith.mulf %328, %332 : vector<2x32xf32>
    %334 = vector.extract_strided_slice %0 {offsets = [6, 0], sizes = [1, 32], strides = [1, 1]} : vector<8x32xf32> to vector<1x32xf32>
    %335 = vector.broadcast %334 : vector<1x32xf32> to vector<2x32xf32>
    %336 = arith.mulf %333, %335 : vector<2x32xf32>
    %cst_68 = arith.constant dense<0.000000e+00> : vector<2xf32>
    %337 = vector.multi_reduction <add>, %336, %cst_68 [1] : vector<2x32xf32> to vector<2xf32>
    %338 = vector.shape_cast %337 : vector<2xf32> to vector<2x1xf32>
    %339 = arith.addf %315, %338 : vector<2x1xf32>
    %340 = vector.extract_strided_slice %169 {offsets = [14, 0], sizes = [2, 128], strides = [1, 1]} : vector<16x128xf32> to vector<2x128xf32>
    %cst_69 = arith.constant dense<0.000000e+00> : vector<2x128xf32>
    %341 = tpu.matmul %333, %165, %cst_69 {dimension_numbers = #tpu.dot_dimension_numbers<[1], [0], [0], [1], [0, 0, 1, 1], [], []>} : vector<2x32xf32>, vector<32x128xf32>, vector<2x128xf32> -> vector<2x128xf32>
    %342 = arith.addf %340, %341 : vector<2x128xf32>
    %343 = arith.negf %342 : vector<2x128xf32>
    %344 = math.exp %343 : vector<2x128xf32>
    %cst_70 = arith.constant 1.000000e+00 : f32
    %345 = vector.broadcast %cst_70 : f32 to vector<2x128xf32>
    %346 = arith.addf %345, %344 : vector<2x128xf32>
    %347 = arith.divf %345, %346 : vector<2x128xf32>
    %348 = math.tanh %342 : vector<2x128xf32>
    %349 = vector.extract_strided_slice %347 {offsets = [0, 0], sizes = [2, 32], strides = [1, 1]} : vector<2x128xf32> to vector<2x32xf32>
    %350 = vector.extract_strided_slice %347 {offsets = [0, 32], sizes = [2, 32], strides = [1, 1]} : vector<2x128xf32> to vector<2x32xf32>
    %351 = vector.extract_strided_slice %348 {offsets = [0, 64], sizes = [2, 32], strides = [1, 1]} : vector<2x128xf32> to vector<2x32xf32>
    %352 = vector.extract_strided_slice %347 {offsets = [0, 96], sizes = [2, 32], strides = [1, 1]} : vector<2x128xf32> to vector<2x32xf32>
    %353 = arith.mulf %350, %331 : vector<2x32xf32>
    %354 = arith.mulf %349, %351 : vector<2x32xf32>
    %355 = arith.addf %353, %354 : vector<2x32xf32>
    %356 = math.tanh %355 : vector<2x32xf32>
    %357 = arith.mulf %352, %356 : vector<2x32xf32>
    %358 = vector.extract_strided_slice %0 {offsets = [7, 0], sizes = [1, 32], strides = [1, 1]} : vector<8x32xf32> to vector<1x32xf32>
    %359 = vector.broadcast %358 : vector<1x32xf32> to vector<2x32xf32>
    %360 = arith.mulf %357, %359 : vector<2x32xf32>
    %cst_71 = arith.constant dense<0.000000e+00> : vector<2xf32>
    %361 = vector.multi_reduction <add>, %360, %cst_71 [1] : vector<2x32xf32> to vector<2xf32>
    %362 = vector.shape_cast %361 : vector<2xf32> to vector<2x1xf32>
    %363 = arith.addf %339, %362 : vector<2x1xf32>
    %c0_72 = arith.constant 0 : index
    %c0_73 = arith.constant 0 : index
    %364 = vector.load %arg8[%c0_72, %c0_73] : memref<1x1xf32, #tpu.memory_space<vmem>>, vector<1x1xf32>
    %365 = vector.broadcast %364 : vector<1x1xf32> to vector<2x1xf32>
    %366 = arith.addf %363, %365 : vector<2x1xf32>
    %367 = arith.negf %366 : vector<2x1xf32>
    %368 = math.exp %367 : vector<2x1xf32>
    %cst_74 = arith.constant 1.000000e+00 : f32
    %369 = vector.broadcast %cst_74 : f32 to vector<2x1xf32>
    %370 = arith.addf %369, %368 : vector<2x1xf32>
    %371 = arith.divf %369, %370 : vector<2x1xf32>
    %c0_75 = arith.constant 0 : index
    %c0_76 = arith.constant 0 : index
    %372 = vector.load %arg9[%c0_75, %c0_76] : memref<2x1xf32, #tpu.memory_space<vmem>>, vector<2x1xf32>
    tpu.vector_store %arg9[%c0_75, %c0_76], %371 {strides = array<i32>} : memref<2x1xf32, #tpu.memory_space<vmem>>, vector<2x1xf32>,
    return
  }
}

</mosaic_0001>

<bundles_post_ra>
// kernel: rgan_d_forward.1
= control target key start
LH: loop header
LB: loop body
LE: loop exit
PB: predicated region body
PF: predicated region fallthrough
CT: control target
= control target key end

     0   :  { %s3215_s0 = inlined_call_operand.vmem [shape: f32[16,4], index: 0, kind: input, shape index: {}]   ;;  %s3216_s1 = inlined_call_operand.hbm [shape: f32[4,128], index: 1, kind: input, shape index: {}]   ;;  %s3217_s2 = inlined_call_operand.hbm [shape: f32[32,128], index: 2, kind: input, shape index: {}]   ;;  %s3218_s3 = inlined_call_operand.hbm [shape: f32[1,128], index: 3, kind: input, shape index: {}]   ;;  %s3219_s4 = inlined_call_operand.vmem [shape: f32[32,128], index: 4, kind: input, shape index: {}]   ;;  %s3220_s5 = inlined_call_operand.hbm [shape: f32[32,128], index: 5, kind: input, shape index: {}]   ;;  %s3221_s6 = inlined_call_operand.hbm [shape: f32[1,128], index: 6, kind: input, shape index: {}]   ;;  %s3222_s7 = inlined_call_operand.vmem [shape: f32[8,32], index: 7, kind: input, shape index: {}]   ;;  %s3223_s8 = inlined_call_operand.<no memory space> [shape: f32[1,1], index: 8, kind: input, shape index: {}]   ;;  %s3224_s9 = inlined_call_operand.vmem [shape: f32[2,1], index: 9, kind: output, shape index: {}]  }
   0x1   :  { %v14_v0 = vstv %s3223_s8 }
   0x2   :  { %15 = vst [vmem:[#allocation3] sm:$0x1] %v14_v0 }
   0x3   :  { %16 = vsyncpa [#allocation5], 0 }
   0x4   :  { %17 = vsyncpa [#allocation7], 0 }
   0x5   :  { %18 = vsyncpa [#allocation10], 0  ;;  %s2757_s11 = smov [#allocation6]  }
   0x6   :  { %s36_s12 = sshll.u32 %s2757_s11, 4  ;;  %s37_s12 = int_to_ptr.vmem [resolvable:$true] %s36_s12 }
   0x7   :  { %s2659_s13 = scalar_lea.vmem %s37_s12, 512  ;;  %p2664_p1 = scmp.lt.s32.totalorder %s37_s12, %s37_s12 }
   0x8   :  { %p2660_p0 = scmp.ne.s32.totalorder %s37_s12, %s2659_s13  ;;  %p2665_p2 = scmp.lt.s32.totalorder %s2659_s13, %s2659_s13 }
   0xa   :  { %p2666_p3 = por %p2665_p2, %p2664_p1 }
   0xc   :  { %p2667_p4 = pnand %p2666_p3, %p2660_p0 }
   0xe   :  { %2670 = shalt.err (!%p2667_p4)
}
   0xf   :  { %s2758_s14 = smov 128   ;;  %s2759_s15 = smov 8  }
  0x10   :  { %42 = dma.hbm_to_vmem [thread:$0]  %s3217_s2, 512, %s37_s12, [#allocation7], %s2758_s14, %s2758_s14, %s2759_s15  }
  0x11   :  { %s2760_s8 = smov [#allocation9]   ;;  %s2761_s19 = smov [#allocation4]  }
  0x12   :  { %s60_s18 = sshll.u32 %s2760_s8, 4  ;;  %s27_s20 = sshll.u32 %s2761_s19, 4  ;;  %s61_s18 = int_to_ptr.vmem [resolvable:$true] %s60_s18  ;;  %s28_s20 = int_to_ptr.vmem [resolvable:$true] %s27_s20 }
  0x13   :  { %s2679_s21 = scalar_lea.vmem %s61_s18, 512  ;;  %p2684_p6 = scmp.lt.s32.totalorder %s61_s18, %s61_s18 }
  0x14   :  { %p2680_p5 = scmp.ne.s32.totalorder %s61_s18, %s2679_s21  ;;  %p2685_p7 = scmp.lt.s32.totalorder %s2679_s21, %s2679_s21 }
  0x16   :  { %p2686_p8 = por %p2685_p7, %p2684_p6 }
  0x18   :  { %p2687_p9 = pnand %p2686_p8, %p2680_p5 }
  0x1a   :  { %2690 = shalt.err (!%p2687_p9)
}
  0x1b   :  { %66 = dma.hbm_to_vmem [thread:$0]  %s3220_s5, 512, %s61_s18, [#allocation10], %s2758_s14, %s2758_s14, %s2759_s15  }
  0x1c   :  { %s2699_s24 = scalar_lea.vmem %s28_s20, 64  ;;  %p2704_p11 = scmp.lt.s32.totalorder %s28_s20, %s28_s20 }
  0x1d   :  { %p2700_p10 = scmp.ne.s32.totalorder %s28_s20, %s2699_s24  ;;  %p2705_p12 = scmp.lt.s32.totalorder %s2699_s24, %s2699_s24 }
  0x1f   :  { %p2706_p13 = por %p2705_p12, %p2704_p11 }
  0x21   :  { %p2707_p0 = pnand %p2706_p13, %p2700_p10 }
  0x23   :  { %2710 = shalt.err (!%p2707_p0)
}
  0x24   :  { %30 = dma.hbm_to_vmem [thread:$0]  %s3216_s1, 64, %s28_s20, [#allocation5]  }
  0x25   :  { %s2762_s26 = smov [#allocation8]   ;;  %s2763_s28 = smov [#allocation11]  }
  0x26   :  { %s49_s27 = sshll.u32 %s2762_s26, 4  ;;  %s73_s29 = sshll.u32 %s2763_s28, 4  ;;  %s50_s27 = int_to_ptr.vmem [resolvable:$true] %s49_s27  ;;  %s74_s29 = int_to_ptr.vmem [resolvable:$true] %s73_s29 }
  0x27   :  { %s2719_s30 = scalar_lea.vmem %s50_s27, 16  ;;  %s2723_s5 = scalar_lea.vmem %s50_s27, 32 }
  0x28   :  { %p2720_p1 = scmp.ne.s32.totalorder %s50_s27, %s2719_s30  ;;  %p2724_p2 = scmp.lt.s32.totalorder %s50_s27, %s50_s27 }
  0x29   :  { %p2725_p3 = scmp.lt.s32.totalorder %s2723_s5, %s2719_s30 }
  0x2b   :  { %p2726_p4 = por %p2725_p3, %p2724_p2 }
  0x2d   :  { %p2727_p5 = pnand %p2726_p4, %p2720_p1 }
  0x2f   :  { %2730 = shalt.err (!%p2727_p5)
}
  0x30   :  { %52 = dma.hbm_to_vmem [thread:$0]  %s3218_s3, 16, %s50_s27, [#allocation7]  }
  0x31   :  { %s2739_s12 = scalar_lea.vmem %s74_s29, 16  ;;  %s2743_s1 = scalar_lea.vmem %s74_s29, 32 }
  0x32   :  { %p2740_p6 = scmp.ne.s32.totalorder %s74_s29, %s2739_s12  ;;  %p2744_p7 = scmp.lt.s32.totalorder %s74_s29, %s74_s29 }
  0x33   :  { %p2745_p8 = scmp.lt.s32.totalorder %s2743_s1, %s2739_s12 }
  0x35   :  { %p2746_p9 = por %p2745_p8, %p2744_p7 }
  0x37   :  { %p2747_p10 = pnand %p2746_p9, %p2740_p6 }
  0x39   :  { %2750 = shalt.err (!%p2747_p10)
}
  0x3a   :  { %76 = dma.hbm_to_vmem [thread:$0]  %s3221_s6, 16, %s74_s29, [#allocation10]  }
  0x3b   :  { %2751 = dma.done.wait [#allocation5], 64  }
  0x3c   :  { %2752 = vsyncadd [#allocation5], 4294967232 }
  0x3d   :  { %2753 = dma.done.wait [#allocation7], 528  }
  0x3e   :  { %2754 = vsyncadd [#allocation7], 4294966768 }
  0x3f   :  { %2755 = dma.done.wait [#allocation10], 528  }
  0x40   :  { %2756 = vsyncadd [#allocation10], 4294966768  ;;  %v2764_v1 = vmov 0.0   ;;  %vm2765_vm0 = vmmov 0   ;;  %vm118_vm1 = vcmask 1043456   ;;  %vm111_vm2 = vcmask 31744  }
  0x41   :  { %2320 = vmatprep.subr.mxu1 %v2764_v1  ;;  %2328 = vmatprep.mubr.msk.f32.mxu1 %vm2765_vm0, %v2764_v1  ;;  %v99_v2 = vld [vmem:[#allocation4] sm:$0xf]  ;;  %v97_v4 = vld [vmem:[%s3215_s0] sm:$0xff]  ;;  %v98_v5 = vld [vmem:[%s3215_s0 + $0x8] sm:$0xff]  ;;  %s2766_s0 = smov 64   ;;  %s2767_s17 = smov 32  }
  0x42   :  { %v2840_v3 = vld [vmem:[#allocation6 + $0x18] sm:$0xff]  ;;  %2315 = vmatprep.subr.msk.mxu0 %vm118_vm1, %v99_v2  ;;  %v2849_v6 = vld [vmem:[#allocation6 + $0x10] sm:$0xff]  ;;  %2317 = vmatprep.mubr.msk.f32.mxu0 %vm111_vm2, %v97_v4  ;;  %v2852_v7 = vld [vmem:[#allocation6 + $0x8] sm:$0xff]  ;;  %vm300_vm3 = vcmask 254976   ;;  %vm197_vm4 = vcmask 261120   ;;  %vm409_vm5 = vcmask 257026  }
  0x43   :  { %2321 = vmatpush3.msra.mxu1 %v2840_v3  ;;  %2316 = vmatpush3.msk.msra.mxu0 %vm118_vm1, %v99_v2  ;;  %v2857_v8 = vld [vmem:[#allocation6] sm:$0xff]  ;;  %vm633_vm6 = vcmask 261126   ;;  %vm521_vm7 = vcmask 259076   ;;  %s2768_s25 = smov 96   ;;  %vm2178_vm8 = vcmask 1024  }
  0x44   :  { %2322 = vmatprep.subr.mxu1 %v2764_v1  ;;  %2318 = vmatmul.mubr.msk.f32.vlgmr.msra.gmra.mxu0 %vm111_vm2, %v98_v5  ;;  %v2187_v9 = vld [vmem:[#allocation8] ss:$0 sm:$0xff] }
  0x45   :  { %2323 = vmatpush3.msra.mxu1 %v2849_v6  ;;  %2331 = vmatprep.subr.mxu0 %v2764_v1 }
  0x46   :  { %2324 = vmatprep.subr.mxu1 %v2764_v1  ;;  %2332 = vmatpush3.msra.mxu0 %v2840_v3 }
  0x47   :  { %2325 = vmatpush3.msra.mxu1 %v2852_v7  ;;  %2333 = vmatprep.subr.mxu0 %v2764_v1 }
  0x48   :  { %2326 = vmatprep.subr.mxu1 %v2764_v1  ;;  %2334 = vmatpush3.msra.mxu0 %v2849_v6 }
  0x49   :  { %2327 = vmatpush3.msra.mxu1 %v2857_v8  ;;  %2335 = vmatprep.subr.mxu0 %v2764_v1 }
  0x4a   :  { %2329 = vmatmul.mubr.f32.vlgmr.msra.gmra.mxu1 %v2764_v1  ;;  %2336 = vmatpush3.msra.mxu0 %v2852_v7 }
  0x4b   :  { %2337 = vmatprep.subr.mxu0 %v2764_v1  ;;  %2339 = vmatprep.mubr.msk.f32.mxu0 %vm2765_vm0, %v2764_v1 }
  0x4c   :  { %2338 = vmatpush3.msra.mxu0 %v2857_v8  ;;  %2342 = vmatprep.subr.mxu1 %v2764_v1 }
  0x4d   :  { %2343 = vmatpush3.msra.mxu1 %v2840_v3  ;;  %2350 = vmatprep.mubr.msk.f32.mxu1 %vm2765_vm0, %v2764_v1 }
  0x4e   :  { %2344 = vmatprep.subr.mxu1 %v2764_v1  ;;  %2353 = vmatprep.subr.mxu0 %v2764_v1 }
  0x4f   :  { %2345 = vmatpush3.msra.mxu1 %v2849_v6 }
  0x50   :  { %2346 = vmatprep.subr.mxu1 %v2764_v1 }
  0x51   :  { %2347 = vmatpush3.msra.mxu1 %v2852_v7 }
  0x52   :  { %2348 = vmatprep.subr.mxu1 %v2764_v1 }
  0x53   :  { %2349 = vmatpush3.msra.mxu1 %v2857_v8 }
  0x54   :  { %2364 = vmatprep.subr.mxu1 %v2764_v1 }
 0x104   :  { %v2319_v10 = vpop.f32.mrf.mxu0 }
 0x105   :  { %v2884_v11 = vadd.f32 %v2319_v10, %v2187_v9 }
 0x106   :  { %v188_v12 = vpop.f32.mrf.mxu0 }
 0x107   :  { %v2886_v13 = vadd.f32 %v2187_v9, %v188_v12 }
 0x10a   :  { %v267_v14 = vpop.f32.mrf.mxu1 }
 0x10b   :  { %v271_v15 = vadd.f32 %v267_v14, %v2886_v13 }
 0x10c   :  { %v2330_v16 = vpop.f32.mrf.mxu1 }
 0x10d   :  { %2519 = vtanh.f32 %v271_v15  ;;  %v2191_v18 = vmul.f32 -1.442695, %v271_v15 }
 0x10f   :  { %2521 = vpow2.f32 %v2191_v18 }
 0x11a   :  { %v2520_v17 = vpop.eup %2519 }
 0x11b   :  { %281 = vrot.lane.b32.xlu0 %v2520_v17, %s2766_s0 }
 0x11c   :  { %v2522_v19 = vpop.eup %2521 }
 0x11d   :  { %v275_v20 = vadd.f32 1.0, %v2522_v19 }
 0x11f   :  { %2523 = vrcp.f32 %v275_v20 }
 0x12c   :  { %v2524_v21 = vpop.eup %2523 }
 0x12d   :  { %v279_v24 = vmul.f32 0.0, %v2524_v21 }
 0x18d   :  { %v282_v22 = vpop.permute.xlu0 %281 }
 0x18e   :  { %v284_v23 = vmul.f32 %v2524_v21, %v282_v22 }
 0x190   :  { %286 = vrot.lane.b32.xlu0 %v284_v23, %s2767_s17 }
 0x202   :  { %v287_v25 = vpop.permute.xlu0 %286 }
 0x203   :  { %v289_v26 = vadd.f32 %v287_v25, %v279_v24 }
 0x205   :  { %2525 = vtanh.f32 %v289_v26  ;;  %v386_v42 = vrot.slane %v289_v26, 6 }
 0x212   :  { %v2526_v27 = vpop.eup %2525 }
 0x213   :  { %292 = vrot.lane.b32.xlu1 %v2526_v27, %s2766_s0 }
 0x285   :  { %v293_v28 = vpop.permute.xlu1 %292 }
 0x286   :  { %v295_v29 = vmul.f32 %v2524_v21, %v293_v28 }
 0x288   :  { %297 = vrot.lane.b32.xlu1 %v295_v29, %s2767_s17 }
 0x2fa   :  { %v298_v30 = vpop.permute.xlu1 %297 }
 0x2fb   :  { %301 = vst.msk [vmem:[#allocation2] sm:$0x3] %vm300_vm3, %v298_v30  ;;  %2340 = vmatmul.mubr.msk.f32.vlgmr.msra.gmra.mxu0 %vm197_vm4, %v298_v30 }
 0x2fc   :  { %2354 = vmatpush3.msra.mxu0 %v2840_v3  ;;  %2361 = vmatprep.mubr.msk.f32.mxu0 %vm2765_vm0, %v2764_v1 }
 0x2fd   :  { %2355 = vmatprep.subr.mxu0 %v2764_v1 }
 0x2fe   :  { %2356 = vmatpush3.msra.mxu0 %v2849_v6 }
 0x2ff   :  { %2357 = vmatprep.subr.mxu0 %v2764_v1 }
 0x300   :  { %2358 = vmatpush3.msra.mxu0 %v2852_v7 }
 0x301   :  { %2359 = vmatprep.subr.mxu0 %v2764_v1 }
 0x302   :  { %2360 = vmatpush3.msra.mxu0 %v2857_v8 }
 0x303   :  { %2375 = vmatprep.subr.mxu0 %v2764_v1 }
 0x3bb   :  { %v370_v31 = vpop.f32.mrf.mxu0 }
 0x3bc   :  { %v375_v32 = vrot.slane %v370_v31, 6 }
 0x3bd   :  { %v2341_v33 = vpop.f32.mrf.mxu0 }
 0x3be   :  { %v377_v34 = vadd.f32 %v375_v32, %v2886_v13 }
 0x3c0   :  { %2527 = vtanh.f32 %v377_v34  ;;  %v2193_v36 = vmul.f32 -1.442695, %v377_v34 }
 0x3c2   :  { %2529 = vpow2.f32 %v2193_v36 }
 0x3cd   :  { %v2528_v35 = vpop.eup %2527 }
 0x3ce   :  { %390 = vrot.lane.b32.xlu0 %v2528_v35, %s2766_s0 }
 0x3cf   :  { %v2530_v37 = vpop.eup %2529 }
 0x3d0   :  { %v381_v38 = vadd.f32 1.0, %v2530_v37 }
 0x3d2   :  { %2531 = vrcp.f32 %v381_v38 }
 0x3df   :  { %v2532_v39 = vpop.eup %2531 }
 0x3e0   :  { %v388_v43 = vmul.f32 %v2532_v39, %v386_v42 }
 0x440   :  { %v391_v40 = vpop.permute.xlu0 %390 }
 0x441   :  { %v393_v41 = vmul.f32 %v2532_v39, %v391_v40 }
 0x443   :  { %395 = vrot.lane.b32.xlu1 %v393_v41, %s2767_s17 }
 0x4b5   :  { %v396_v44 = vpop.permute.xlu1 %395 }
 0x4b6   :  { %v398_v45 = vadd.f32 %v396_v44, %v388_v43 }
 0x4b8   :  { %2533 = vtanh.f32 %v398_v45  ;;  %v498_v62 = vrot.slane %v398_v45, 6 }
 0x4c5   :  { %v2534_v46 = vpop.eup %2533 }
 0x4c6   :  { %401 = vrot.lane.b32.xlu0 %v2534_v46, %s2766_s0 }
 0x538   :  { %v402_v47 = vpop.permute.xlu0 %401 }
 0x539   :  { %v2909_v48 = vmul.f32 %v2532_v39, %v402_v47 }
 0x53b   :  { %v411_v49 = vrot.slane %v2909_v48, 2 }
 0x53d   :  { %412 = vrot.lane.b32.xlu1 %v411_v49, %s2767_s17 }
 0x5af   :  { %v413_v50 = vpop.permute.xlu1 %412 }
 0x5b0   :  { %2351 = vmatmul.mubr.msk.f32.vlgmr.msra.gmra.mxu1 %vm197_vm4, %v413_v50 }
 0x5b1   :  { %2365 = vmatpush3.msra.mxu1 %v2840_v3  ;;  %2372 = vmatprep.mubr.msk.f32.mxu1 %vm2765_vm0, %v2764_v1 }
 0x5b2   :  { %2366 = vmatprep.subr.mxu1 %v2764_v1 }
 0x5b3   :  { %2367 = vmatpush3.msra.mxu1 %v2849_v6 }
 0x5b4   :  { %2368 = vmatprep.subr.mxu1 %v2764_v1 }
 0x5b5   :  { %2369 = vmatpush3.msra.mxu1 %v2852_v7 }
 0x5b6   :  { %2370 = vmatprep.subr.mxu1 %v2764_v1 }
 0x5b7   :  { %2371 = vmatpush3.msra.mxu1 %v2857_v8 }
 0x5b8   :  { %2386 = vmatprep.subr.mxu1 %v2764_v1 }
 0x670   :  { %v482_v51 = vpop.f32.mrf.mxu1 }
 0x671   :  { %v487_v52 = vrot.slane %v482_v51, 4 }
 0x672   :  { %v2352_v53 = vpop.f32.mrf.mxu1 }
 0x673   :  { %v489_v54 = vadd.f32 %v487_v52, %v2886_v13 }
 0x675   :  { %2535 = vtanh.f32 %v489_v54  ;;  %v2195_v56 = vmul.f32 -1.442695, %v489_v54 }
 0x677   :  { %2537 = vpow2.f32 %v2195_v56 }
 0x682   :  { %v2536_v55 = vpop.eup %2535 }
 0x683   :  { %502 = vrot.lane.b32.xlu0 %v2536_v55, %s2766_s0 }
 0x684   :  { %v2538_v57 = vpop.eup %2537 }
 0x685   :  { %v493_v58 = vadd.f32 1.0, %v2538_v57 }
 0x687   :  { %2539 = vrcp.f32 %v493_v58 }
 0x694   :  { %v2540_v59 = vpop.eup %2539 }
 0x695   :  { %v500_v63 = vmul.f32 %v2540_v59, %v498_v62 }
 0x6f5   :  { %v503_v60 = vpop.permute.xlu0 %502 }
 0x6f6   :  { %v505_v61 = vmul.f32 %v2540_v59, %v503_v60 }
 0x6f8   :  { %507 = vrot.lane.b32.xlu1 %v505_v61, %s2767_s17 }
 0x76a   :  { %v508_v0 = vpop.permute.xlu1 %507 }
 0x76b   :  { %v510_v2 = vadd.f32 %v508_v0, %v500_v63 }
 0x76d   :  { %2541 = vtanh.f32 %v510_v2  ;;  %v610_v25 = vrot.slane %v510_v2, 6 }
 0x77a   :  { %v2542_v4 = vpop.eup %2541 }
 0x77b   :  { %513 = vrot.lane.b32.xlu0 %v2542_v4, %s2766_s0 }
 0x7ed   :  { %v514_v5 = vpop.permute.xlu0 %513 }
 0x7ee   :  { %v2928_v9 = vmul.f32 %v2540_v59, %v514_v5 }
 0x7f0   :  { %v523_v10 = vrot.slane %v2928_v9, 4 }
 0x7f2   :  { %524 = vrot.lane.b32.xlu1 %v523_v10, %s2767_s17 }
 0x864   :  { %v525_v12 = vpop.permute.xlu1 %524 }
 0x865   :  { %2362 = vmatmul.mubr.msk.f32.vlgmr.msra.gmra.mxu0 %vm197_vm4, %v525_v12 }
 0x866   :  { %2376 = vmatpush3.msra.mxu0 %v2840_v3  ;;  %2383 = vmatprep.mubr.msk.f32.mxu0 %vm2765_vm0, %v2764_v1 }
 0x867   :  { %2377 = vmatprep.subr.mxu0 %v2764_v1 }
 0x868   :  { %2378 = vmatpush3.msra.mxu0 %v2849_v6 }
 0x869   :  { %2379 = vmatprep.subr.mxu0 %v2764_v1 }
 0x86a   :  { %2380 = vmatpush3.msra.mxu0 %v2852_v7 }
 0x86b   :  { %2381 = vmatprep.subr.mxu0 %v2764_v1 }
 0x86c   :  { %2382 = vmatpush3.msra.mxu0 %v2857_v8 }
 0x86d   :  { %2397 = vmatprep.subr.mxu0 %v2764_v1 }
 0x925   :  { %v594_v14 = vpop.f32.mrf.mxu0 }
 0x926   :  { %v599_v15 = vrot.slane %v594_v14, 2 }
 0x927   :  { %v2363_v16 = vpop.f32.mrf.mxu0 }
 0x928   :  { %v601_v17 = vadd.f32 %v599_v15, %v2886_v13 }
 0x92a   :  { %2543 = vtanh.f32 %v601_v17  ;;  %v2197_v19 = vmul.f32 -1.442695, %v601_v17 }
 0x92c   :  { %2545 = vpow2.f32 %v2197_v19 }
 0x937   :  { %v2544_v18 = vpop.eup %2543 }
 0x938   :  { %614 = vrot.lane.b32.xlu0 %v2544_v18, %s2766_s0 }
 0x939   :  { %v2546_v20 = vpop.eup %2545 }
 0x93a   :  { %v605_v21 = vadd.f32 1.0, %v2546_v20 }
 0x93c   :  { %2547 = vrcp.f32 %v605_v21 }
 0x949   :  { %v2548_v22 = vpop.eup %2547 }
 0x94a   :  { %v612_v26 = vmul.f32 %v2548_v22, %v610_v25 }
 0x9aa   :  { %v615_v23 = vpop.permute.xlu0 %614 }
 0x9ab   :  { %v617_v24 = vmul.f32 %v2548_v22, %v615_v23 }
 0x9ad   :  { %619 = vrot.lane.b32.xlu1 %v617_v24, %s2767_s17 }
 0xa1f   :  { %v620_v27 = vpop.permute.xlu1 %619 }
 0xa20   :  { %v622_v28 = vadd.f32 %v620_v27, %v612_v26 }
 0xa22   :  { %2549 = vtanh.f32 %v622_v28  ;;  %v719_v43 = vrot.slane %v622_v28, 6 }
 0xa2f   :  { %v2550_v13 = vpop.eup %2549 }
 0xa30   :  { %625 = vrot.lane.b32.xlu0 %v2550_v13, %s2766_s0 }
 0xaa2   :  { %v626_v29 = vpop.permute.xlu0 %625 }
 0xaa3   :  { %v2947_v30 = vmul.f32 %v2548_v22, %v626_v29 }
 0xaa5   :  { %v635_v31 = vrot.slane %v2947_v30, 6 }
 0xaa7   :  { %636 = vrot.lane.b32.xlu1 %v635_v31, %s2767_s17 }
 0xb19   :  { %v637_v32 = vpop.permute.xlu1 %636 }
 0xb1a   :  { %2373 = vmatmul.mubr.msk.f32.vlgmr.msra.gmra.mxu1 %vm197_vm4, %v637_v32 }
 0xb1b   :  { %2387 = vmatpush3.msra.mxu1 %v2840_v3  ;;  %2394 = vmatprep.mubr.msk.f32.mxu1 %vm2765_vm0, %v2764_v1 }
 0xb1c   :  { %2388 = vmatprep.subr.mxu1 %v2764_v1 }
 0xb1d   :  { %2389 = vmatpush3.msra.mxu1 %v2849_v6 }
 0xb1e   :  { %2390 = vmatprep.subr.mxu1 %v2764_v1 }
 0xb1f   :  { %2391 = vmatpush3.msra.mxu1 %v2852_v7 }
 0xb20   :  { %2392 = vmatprep.subr.mxu1 %v2764_v1 }
 0xb21   :  { %2393 = vmatpush3.msra.mxu1 %v2857_v8 }
 0xbda   :  { %v706_v33 = vpop.f32.mrf.mxu1 }
 0xbdb   :  { %v710_v34 = vadd.f32 %v706_v33, %v2884_v11 }
 0xbdc   :  { %v2374_v35 = vpop.f32.mrf.mxu1 }
 0xbdd   :  { %2551 = vtanh.f32 %v710_v34  ;;  %v2199_v37 = vmul.f32 -1.442695, %v710_v34 }
 0xbdf   :  { %2553 = vpow2.f32 %v2199_v37 }
 0xbea   :  { %v2552_v36 = vpop.eup %2551 }
 0xbeb   :  { %723 = vrot.lane.b32.xlu0 %v2552_v36, %s2766_s0 }
 0xbec   :  { %v2554_v38 = vpop.eup %2553 }
 0xbed   :  { %v714_v39 = vadd.f32 1.0, %v2554_v38 }
 0xbef   :  { %2555 = vrcp.f32 %v714_v39 }
 0xbfc   :  { %v2556_v40 = vpop.eup %2555 }
 0xbfd   :  { %v721_v44 = vmul.f32 %v2556_v40, %v719_v43 }
 0xc5d   :  { %v724_v41 = vpop.permute.xlu0 %723 }
 0xc5e   :  { %v726_v42 = vmul.f32 %v2556_v40, %v724_v41 }
 0xc60   :  { %728 = vrot.lane.b32.xlu1 %v726_v42, %s2767_s17 }
 0xcd2   :  { %v729_v45 = vpop.permute.xlu1 %728 }
 0xcd3   :  { %v731_v46 = vadd.f32 %v729_v45, %v721_v44 }
 0xcd5   :  { %2557 = vtanh.f32 %v731_v46 }
 0xce2   :  { %v2558_v47 = vpop.eup %2557 }
 0xce3   :  { %734 = vrot.lane.b32.xlu0 %v2558_v47, %s2766_s0 }
 0xd55   :  { %v735_v49 = vpop.permute.xlu0 %734 }
 0xd56   :  { %v737_v50 = vmul.f32 %v2556_v40, %v735_v49  ;;  %v1078_v49 = vld [vmem:[%s3219_s4 + $0x18] sm:$0xff] }
 0xd57   :  { %2408 = vmatprep.subr.mxu1 %v1078_v49 }
 0xd58   :  { %739 = vrot.lane.b32.xlu1 %v737_v50, %s2767_s17  ;;  %v1077_v50 = vld [vmem:[%s3219_s4 + $0x10] sm:$0xff] }
 0xdca   :  { %v740_v51 = vpop.permute.xlu1 %739 }
 0xdcb   :  { %742 = vst.msk [vmem:[#allocation2 + $0x8] sm:$0x3] %vm300_vm3, %v740_v51  ;;  %2384 = vmatmul.mubr.msk.f32.vlgmr.msra.gmra.mxu0 %vm197_vm4, %v740_v51  ;;  %v3017_v51 = vld [vmem:[#allocation9 + $0x18] sm:$0xff] }
 0xdcc   :  { %2398 = vmatpush3.msra.mxu0 %v2840_v3  ;;  %2405 = vmatprep.mubr.msk.f32.mxu0 %vm2765_vm0, %v2764_v1 }
 0xdcd   :  { %2399 = vmatprep.subr.mxu0 %v2764_v1 }
 0xdce   :  { %2400 = vmatpush3.msra.mxu0 %v2849_v6 }
 0xdcf   :  { %2401 = vmatprep.subr.mxu0 %v2764_v1 }
 0xdd0   :  { %2402 = vmatpush3.msra.mxu0 %v2852_v7 }
 0xdd1   :  { %2403 = vmatprep.subr.mxu0 %v2764_v1 }
 0xdd2   :  { %2404 = vmatpush3.msra.mxu0 %v2857_v8  ;;  %v827_v8 = vrot.slane %v731_v46, 6 }
 0xdd3   :  { %2419 = vmatprep.subr.mxu0 %v2764_v1 }
 0xe8b   :  { %v811_v52 = vpop.f32.mrf.mxu0 }
 0xe8c   :  { %v816_v53 = vrot.slane %v811_v52, 6  ;;  %v3023_v52 = vld [vmem:[#allocation9 + $0x10] sm:$0xff] }
 0xe8d   :  { %v2385_v3 = vpop.f32.mrf.mxu0 }
 0xe8e   :  { %v818_v54 = vadd.f32 %v816_v53, %v2884_v11  ;;  %v3026_v53 = vld [vmem:[#allocation9 + $0x8] sm:$0xff] }
 0xe8f   :  { %v1075_v3 = vld [vmem:[%s3219_s4] sm:$0xff] }
 0xe90   :  { %2559 = vtanh.f32 %v818_v54  ;;  %v2201_v6 = vmul.f32 -1.442695, %v818_v54  ;;  %v3035_v54 = vld [vmem:[#allocation9] sm:$0xff] }
 0xe92   :  { %2561 = vpow2.f32 %v2201_v6 }
 0xe9d   :  { %v2560_v55 = vpop.eup %2559 }
 0xe9e   :  { %831 = vrot.lane.b32.xlu0 %v2560_v55, %s2766_s0 }
 0xe9f   :  { %v2562_v56 = vpop.eup %2561 }
 0xea0   :  { %v822_v57 = vadd.f32 1.0, %v2562_v56 }
 0xea2   :  { %2563 = vrcp.f32 %v822_v57 }
 0xeaf   :  { %v2564_v7 = vpop.eup %2563 }
 0xeb0   :  { %v829_v60 = vmul.f32 %v2564_v7, %v827_v8 }
 0xf10   :  { %v832_v58 = vpop.permute.xlu0 %831 }
 0xf11   :  { %v834_v59 = vmul.f32 %v2564_v7, %v832_v58 }
 0xf13   :  { %836 = vrot.lane.b32.xlu1 %v834_v59, %s2767_s17 }
 0xf85   :  { %v837_v61 = vpop.permute.xlu1 %836 }
 0xf86   :  { %v839_v62 = vadd.f32 %v837_v61, %v829_v60  ;;  %v2206_v61 = vld [vmem:[#allocation11] ss:$0 sm:$0xff] }
 0xf88   :  { %2565 = vtanh.f32 %v839_v62  ;;  %v938_v23 = vrot.slane %v839_v62, 6 }
 0xf95   :  { %v2566_v63 = vpop.eup %2565 }
 0xf96   :  { %842 = vrot.lane.b32.xlu0 %v2566_v63, %s2766_s0 }
0x1008   :  { %v843_v0 = vpop.permute.xlu0 %842 }
0x1009   :  { %v2982_v2 = vmul.f32 %v2564_v7, %v843_v0 }
0x100b   :  { %v851_v4 = vrot.slane %v2982_v2, 2 }
0x100d   :  { %852 = vrot.lane.b32.xlu1 %v851_v4, %s2767_s17 }
0x107f   :  { %v853_v5 = vpop.permute.xlu1 %852 }
0x1080   :  { %2395 = vmatmul.mubr.msk.f32.vlgmr.msra.gmra.mxu1 %vm197_vm4, %v853_v5 }
0x1081   :  { %2409 = vmatpush3.msra.mxu1 %v1078_v49 }
0x1082   :  { %2410 = vmatprep.subr.mxu1 %v1077_v50 }
0x1083   :  { %2411 = vmatpush3.msra.mxu1 %v1077_v50 }
0x1140   :  { %v922_v10 = vpop.f32.mrf.mxu1 }
0x1141   :  { %v927_v12 = vrot.slane %v922_v10, 4 }
0x1142   :  { %v2396_v14 = vpop.f32.mrf.mxu1 }
0x1143   :  { %v929_v15 = vadd.f32 %v927_v12, %v2884_v11 }
0x1145   :  { %2567 = vtanh.f32 %v929_v15  ;;  %v2203_v17 = vmul.f32 -1.442695, %v929_v15 }
0x1147   :  { %2569 = vpow2.f32 %v2203_v17 }
0x1152   :  { %v2568_v16 = vpop.eup %2567 }
0x1153   :  { %942 = vrot.lane.b32.xlu0 %v2568_v16, %s2766_s0 }
0x1154   :  { %v2570_v18 = vpop.eup %2569 }
0x1155   :  { %v933_v19 = vadd.f32 1.0, %v2570_v18 }
0x1157   :  { %2571 = vrcp.f32 %v933_v19 }
0x1164   :  { %v2572_v20 = vpop.eup %2571 }
0x1165   :  { %v940_v24 = vmul.f32 %v2572_v20, %v938_v23 }
0x11c5   :  { %v943_v21 = vpop.permute.xlu0 %942 }
0x11c6   :  { %v945_v22 = vmul.f32 %v2572_v20, %v943_v21 }
0x11c8   :  { %947 = vrot.lane.b32.xlu1 %v945_v22, %s2767_s17 }
0x123a   :  { %v948_v25 = vpop.permute.xlu1 %947 }
0x123b   :  { %v950_v26 = vadd.f32 %v948_v25, %v940_v24 }
0x123d   :  { %2573 = vtanh.f32 %v950_v26 }
0x124a   :  { %v2574_v27 = vpop.eup %2573 }
0x124b   :  { %953 = vrot.lane.b32.xlu0 %v2574_v27, %s2766_s0 }
0x12bd   :  { %v954_v28 = vpop.permute.xlu0 %953 }
0x12be   :  { %v956_v13 = vmul.f32 %v2572_v20, %v954_v28 }
0x12c0   :  { %v962_v29 = vrot.slane %v956_v13, 4 }
0x12c2   :  { %963 = vrot.lane.b32.xlu1 %v962_v29, %s2767_s17 }
0x1334   :  { %v964_v31 = vpop.permute.xlu1 %963 }
0x1335   :  { %2406 = vmatmul.mubr.msk.f32.vlgmr.msra.gmra.mxu0 %vm197_vm4, %v964_v31 }
0x1336   :  { %2427 = vmatprep.mubr.msk.f32.mxu0 %vm2765_vm0, %v2764_v1  ;;  %2420 = vmatpush3.msra.mxu0 %v3017_v51 }
0x1337   :  { %2421 = vmatprep.subr.mxu0 %v2764_v1 }
0x1338   :  { %2422 = vmatpush3.msra.mxu0 %v3023_v52 }
0x1339   :  { %2423 = vmatprep.subr.mxu0 %v2764_v1 }
0x133a   :  { %2424 = vmatpush3.msra.mxu0 %v3026_v53 }
0x133b   :  { %2425 = vmatprep.subr.mxu0 %v2764_v1 }
0x133c   :  { %2426 = vmatpush3.msra.mxu0 %v3035_v54 }
0x133d   :  { %2428 = vmatmul.mubr.f32.vlgmr.msra.gmra.mxu0 %v2764_v1  ;;  %2441 = vmatprep.subr.mxu0 %v2764_v1 }
0x133e   :  { %2442 = vmatpush3.msra.mxu0 %v3017_v51  ;;  %2449 = vmatprep.mubr.msk.f32.mxu0 %vm2765_vm0, %v2764_v1 }
0x133f   :  { %2443 = vmatprep.subr.mxu0 %v2764_v1 }
0x1340   :  { %2444 = vmatpush3.msra.mxu0 %v3023_v52 }
0x1341   :  { %2445 = vmatprep.subr.mxu0 %v2764_v1 }
0x1342   :  { %2446 = vmatpush3.msra.mxu0 %v3026_v53 }
0x1343   :  { %2447 = vmatprep.subr.mxu0 %v2764_v1 }
0x1344   :  { %2448 = vmatpush3.msra.mxu0 %v3035_v54 }
0x1345   :  { %2463 = vmatprep.subr.mxu0 %v2764_v1 }
0x13f5   :  { %v1033_v32 = vpop.f32.mrf.mxu0 }
0x13f6   :  { %v1038_v33 = vrot.slane %v1033_v32, 2 }
0x13f7   :  { %v2407_v34 = vpop.f32.mrf.mxu0 }
0x13f8   :  { %v1040_v35 = vadd.f32 %v1038_v33, %v2884_v11  ;;  %v1049_v11 = vrot.slane %v950_v26, 6 }
0x13fa   :  { %2575 = vtanh.f32 %v1040_v35  ;;  %v2205_v37 = vmul.f32 -1.442695, %v1040_v35 }
0x13fc   :  { %2577 = vpow2.f32 %v2205_v37 }
0x13fd   :  { %v1237_v8 = vpop.f32.mrf.mxu0 }
0x13ff   :  { %v2429_v60 = vpop.f32.mrf.mxu0 }
0x1407   :  { %v2576_v36 = vpop.eup %2575 }
0x1408   :  { %1053 = vrot.lane.b32.xlu0 %v2576_v36, %s2766_s0 }
0x1409   :  { %v2578_v38 = vpop.eup %2577 }
0x140a   :  { %v1044_v39 = vadd.f32 1.0, %v2578_v38 }
0x140c   :  { %2579 = vrcp.f32 %v1044_v39 }
0x1419   :  { %v2580_v40 = vpop.eup %2579 }
0x141a   :  { %v1051_v43 = vmul.f32 %v2580_v40, %v1049_v11 }
0x147a   :  { %v1054_v41 = vpop.permute.xlu0 %1053 }
0x147b   :  { %v1056_v42 = vmul.f32 %v2580_v40, %v1054_v41 }
0x147d   :  { %1058 = vrot.lane.b32.xlu1 %v1056_v42, %s2767_s17 }
0x1481   :  { %406 = vrot.lane.b32.xlu1 %v2909_v48, %s2767_s17 }
0x1485   :  { %630 = vrot.lane.b32.xlu1 %v2947_v30, %s2767_s17 }
0x1489   :  { %958 = vrot.lane.b32.xlu1 %v956_v13, %s2767_s17 }
0x14ef   :  { %v1059_v44 = vpop.permute.xlu1 %1058 }
0x14f0   :  { %v1061_v45 = vadd.f32 %v1059_v44, %v1051_v43 }
0x14f2   :  { %2581 = vtanh.f32 %v1061_v45 }
0x14f3   :  { %v407_v46 = vpop.permute.xlu1 %406 }
0x14f4   :  { %410 = vst.msk [vmem:[#allocation2] sm:$0xc] %vm409_vm5, %v407_v46 }
0x14f7   :  { %v631_v47 = vpop.permute.xlu1 %630 }
0x14f8   :  { %634 = vst.msk [vmem:[#allocation2] sm:$0xc0] %vm633_vm6, %v631_v47 }
0x14fb   :  { %v959_v48 = vpop.permute.xlu1 %958 }
0x14fc   :  { %961 = vst.msk [vmem:[#allocation2 + $0x8] sm:$0x30] %vm521_vm7, %v959_v48 }
0x14ff   :  { %v2582_v30 = vpop.eup %2581 }
0x1500   :  { %1064 = vrot.lane.b32.xlu0 %v2582_v30, %s2766_s0 }
0x1504   :  { %518 = vrot.lane.b32.xlu0 %v2928_v9, %s2767_s17  ;;  %v1076_v9 = vld [vmem:[%s3219_s4 + $0x8] sm:$0xff] }
0x1505   :  { %2412 = vmatprep.subr.mxu1 %v1076_v9 }
0x1506   :  { %2413 = vmatpush3.msra.mxu1 %v1076_v9 }
0x1507   :  { %2414 = vmatprep.subr.mxu1 %v1075_v3 }
0x1508   :  { %847 = vrot.lane.b32.xlu0 %v2982_v2, %s2767_s17  ;;  %2415 = vmatpush3.msra.mxu1 %v1075_v3 }
0x1509   :  { %2430 = vmatprep.subr.mxu1 %v2764_v1 }
0x1572   :  { %v1065_v55 = vpop.permute.xlu0 %1064 }
0x1573   :  { %v1067_v6 = vmul.f32 %v2580_v40, %v1065_v55 }
0x1575   :  { %1069 = vrot.lane.b32.xlu0 %v1067_v6, %s2767_s17 }
0x1576   :  { %v519_v56 = vpop.permute.xlu0 %518 }
0x1577   :  { %522 = vst.msk [vmem:[#allocation2] sm:$0x30] %vm521_vm7, %v519_v56 }
0x157a   :  { %v848_v57 = vpop.permute.xlu0 %847 }
0x157b   :  { %850 = vst.msk [vmem:[#allocation2 + $0x8] sm:$0xc] %vm409_vm5, %v848_v57 }
0x157e   :  { %v1073_v7 = vld [vmem:[#allocation2] sm:$0xff] }
0x157f   :  { %2416 = vmatprep.mubr.msk.f32.mxu1 %vm197_vm4, %v1073_v7 }
0x15e7   :  { %v1070_v58 = vpop.permute.xlu0 %1069 }
0x15e8   :  { %1072 = vst.msk [vmem:[#allocation2 + $0x8] sm:$0xc0] %vm633_vm6, %v1070_v58 }
0x15ef   :  { %v1074_v59 = vld [vmem:[#allocation2 + $0x8] sm:$0xff] }
0x15f0   :  { %2417 = vmatmul.mubr.msk.f32.vlgmr.msra.gmra.mxu1 %vm197_vm4, %v1074_v59 }
0x15f1   :  { %2431 = vmatpush3.msra.mxu1 %v3017_v51  ;;  %2438 = vmatprep.mubr.msk.f32.mxu1 %vm2765_vm0, %v2764_v1 }
0x15f2   :  { %2432 = vmatprep.subr.mxu1 %v2764_v1 }
0x15f3   :  { %2433 = vmatpush3.msra.mxu1 %v3023_v52 }
0x15f4   :  { %2434 = vmatprep.subr.mxu1 %v2764_v1 }
0x15f5   :  { %2435 = vmatpush3.msra.mxu1 %v3026_v53 }
0x15f6   :  { %2436 = vmatprep.subr.mxu1 %v2764_v1 }
0x15f7   :  { %2437 = vmatpush3.msra.mxu1 %v3035_v54 }
0x15f8   :  { %2452 = vmatprep.subr.mxu1 %v2764_v1 }
0x16b0   :  { %v2418_v62 = vpop.f32.mrf.mxu1 }
0x16b1   :  { %v3067_v63 = vadd.f32 %v2418_v62, %v2206_v61 }
0x16b2   :  { %v1162_v0 = vpop.f32.mrf.mxu1 }
0x16b3   :  { %v3069_v2 = vadd.f32 %v2206_v61, %v1162_v0 }
0x16b5   :  { %v1241_v4 = vadd.f32 %v1237_v8, %v3069_v2 }
0x16b7   :  { %2583 = vtanh.f32 %v1241_v4  ;;  %v2209_v10 = vmul.f32 -1.442695, %v1241_v4 }
0x16b9   :  { %2585 = vpow2.f32 %v2209_v10 }
0x16c4   :  { %v2584_v5 = vpop.eup %2583 }
0x16c5   :  { %1251 = vrot.lane.b32.xlu1 %v2584_v5, %s2766_s0 }
0x16c6   :  { %v2586_v12 = vpop.eup %2585 }
0x16c7   :  { %v1245_v14 = vadd.f32 1.0, %v2586_v12 }
0x16c9   :  { %2587 = vrcp.f32 %v1245_v14 }
0x16d6   :  { %v2588_v15 = vpop.eup %2587 }
0x16d7   :  { %v1249_v18 = vmul.f32 0.0, %v2588_v15 }
0x1737   :  { %v1252_v16 = vpop.permute.xlu1 %1251 }
0x1738   :  { %v1254_v17 = vmul.f32 %v2588_v15, %v1252_v16 }
0x173a   :  { %1256 = vrot.lane.b32.xlu0 %v1254_v17, %s2767_s17 }
0x17ac   :  { %v1257_v19 = vpop.permute.xlu0 %1256 }
0x17ad   :  { %v1259_v20 = vadd.f32 %v1257_v19, %v1249_v18 }
0x17af   :  { %2589 = vtanh.f32 %v1259_v20  ;;  %v1370_v36 = vrot.slane %v1259_v20, 6 }
0x17bc   :  { %v2590_v21 = vpop.eup %2589 }
0x17bd   :  { %1262 = vrot.lane.b32.xlu1 %v2590_v21, %s2766_s0 }
0x182f   :  { %v1263_v22 = vpop.permute.xlu1 %1262 }
0x1830   :  { %v3075_v23 = vmul.f32 %v2588_v15, %v1263_v22 }
0x1832   :  { %1284 = vrot.lane.b32.xlu0 %v3075_v23, %s2767_s17 }
0x18a4   :  { %v1285_v24 = vpop.permute.xlu0 %1284 }
0x18a5   :  { %2439 = vmatmul.mubr.msk.f32.vlgmr.msra.gmra.mxu1 %vm197_vm4, %v1285_v24 }
0x18a6   :  { %2453 = vmatpush3.msra.mxu1 %v3017_v51  ;;  %2460 = vmatprep.mubr.msk.f32.mxu1 %vm2765_vm0, %v2764_v1 }
0x18a7   :  { %2454 = vmatprep.subr.mxu1 %v2764_v1 }
0x18a8   :  { %2455 = vmatpush3.msra.mxu1 %v3023_v52 }
0x18a9   :  { %2456 = vmatprep.subr.mxu1 %v2764_v1 }
0x18aa   :  { %2457 = vmatpush3.msra.mxu1 %v3026_v53 }
0x18ab   :  { %2458 = vmatprep.subr.mxu1 %v2764_v1 }
0x18ac   :  { %2459 = vmatpush3.msra.mxu1 %v3035_v54 }
0x18ad   :  { %2474 = vmatprep.subr.mxu1 %v2764_v1 }
0x1965   :  { %v1354_v25 = vpop.f32.mrf.mxu1 }
0x1966   :  { %v1359_v26 = vrot.slane %v1354_v25, 6 }
0x1967   :  { %v2440_v27 = vpop.f32.mrf.mxu1 }
0x1968   :  { %v1361_v28 = vadd.f32 %v1359_v26, %v3069_v2 }
0x196a   :  { %2591 = vtanh.f32 %v1361_v28  ;;  %v2211_v29 = vmul.f32 -1.442695, %v1361_v28 }
0x196c   :  { %2593 = vpow2.f32 %v2211_v29 }
0x1977   :  { %v2592_v13 = vpop.eup %2591 }
0x1978   :  { %1374 = vrot.lane.b32.xlu1 %v2592_v13, %s2766_s0 }
0x1979   :  { %v2594_v31 = vpop.eup %2593 }
0x197a   :  { %v1365_v32 = vadd.f32 1.0, %v2594_v31 }
0x197c   :  { %2595 = vrcp.f32 %v1365_v32 }
0x1989   :  { %v2596_v33 = vpop.eup %2595 }
0x198a   :  { %v1372_v37 = vmul.f32 %v2596_v33, %v1370_v36 }
0x19ea   :  { %v1375_v34 = vpop.permute.xlu1 %1374 }
0x19eb   :  { %v1377_v35 = vmul.f32 %v2596_v33, %v1375_v34 }
0x19ed   :  { %1379 = vrot.lane.b32.xlu0 %v1377_v35, %s2767_s17 }
0x1a5f   :  { %v1380_v38 = vpop.permute.xlu0 %1379 }
0x1a60   :  { %v1382_v39 = vadd.f32 %v1380_v38, %v1372_v37 }
0x1a62   :  { %2597 = vtanh.f32 %v1382_v39  ;;  %v1497_v6 = vrot.slane %v1382_v39, 6 }
0x1a6f   :  { %v2598_v40 = vpop.eup %2597 }
0x1a70   :  { %1385 = vrot.lane.b32.xlu1 %v2598_v40, %s2766_s0 }
0x1ae2   :  { %v1386_v41 = vpop.permute.xlu1 %1385 }
0x1ae3   :  { %v3094_v42 = vmul.f32 %v2596_v33, %v1386_v41 }
0x1ae5   :  { %v1410_v11 = vrot.slane %v3094_v42, 2 }
0x1ae7   :  { %1411 = vrot.lane.b32.xlu0 %v1410_v11, %s2767_s17 }
0x1b59   :  { %v1412_v43 = vpop.permute.xlu0 %1411 }
0x1b5a   :  { %2450 = vmatmul.mubr.msk.f32.vlgmr.msra.gmra.mxu0 %vm197_vm4, %v1412_v43 }
0x1b5b   :  { %2464 = vmatpush3.msra.mxu0 %v3017_v51  ;;  %2471 = vmatprep.mubr.msk.f32.mxu0 %vm2765_vm0, %v2764_v1 }
0x1b5c   :  { %2465 = vmatprep.subr.mxu0 %v2764_v1 }
0x1b5d   :  { %2466 = vmatpush3.msra.mxu0 %v3023_v52 }
0x1b5e   :  { %2467 = vmatprep.subr.mxu0 %v2764_v1 }
0x1b5f   :  { %2468 = vmatpush3.msra.mxu0 %v3026_v53 }
0x1b60   :  { %2469 = vmatprep.subr.mxu0 %v2764_v1 }
0x1b61   :  { %2470 = vmatpush3.msra.mxu0 %v3035_v54 }
0x1b62   :  { %2485 = vmatprep.subr.mxu0 %v2764_v1 }
0x1c1a   :  { %v1481_v44 = vpop.f32.mrf.mxu0 }
0x1c1b   :  { %v1486_v45 = vrot.slane %v1481_v44, 4 }
0x1c1c   :  { %v2451_v46 = vpop.f32.mrf.mxu0 }
0x1c1d   :  { %v1488_v47 = vadd.f32 %v1486_v45, %v3069_v2 }
0x1c1f   :  { %2599 = vtanh.f32 %v1488_v47  ;;  %v2213_v30 = vmul.f32 -1.442695, %v1488_v47 }
0x1c21   :  { %2601 = vpow2.f32 %v2213_v30 }
0x1c2c   :  { %v2600_v48 = vpop.eup %2599 }
0x1c2d   :  { %1501 = vrot.lane.b32.xlu1 %v2600_v48, %s2766_s0 }
0x1c2e   :  { %v2602_v49 = vpop.eup %2601 }
0x1c2f   :  { %v1492_v50 = vadd.f32 1.0, %v2602_v49 }
0x1c31   :  { %2603 = vrcp.f32 %v1492_v50 }
0x1c3e   :  { %v2604_v9 = vpop.eup %2603 }
0x1c3f   :  { %v1499_v56 = vmul.f32 %v2604_v9, %v1497_v6 }
0x1c9f   :  { %v1502_v3 = vpop.permute.xlu1 %1501 }
0x1ca0   :  { %v1504_v55 = vmul.f32 %v2604_v9, %v1502_v3 }
0x1ca2   :  { %1506 = vrot.lane.b32.xlu0 %v1504_v55, %s2767_s17 }
0x1d14   :  { %v1507_v57 = vpop.permute.xlu0 %1506 }
0x1d15   :  { %v1509_v7 = vadd.f32 %v1507_v57, %v1499_v56 }
0x1d17   :  { %2605 = vtanh.f32 %v1509_v7  ;;  %v1624_v19 = vrot.slane %v1509_v7, 6 }
0x1d24   :  { %v2606_v58 = vpop.eup %2605 }
0x1d25   :  { %1512 = vrot.lane.b32.xlu1 %v2606_v58, %s2766_s0 }
0x1d97   :  { %v1513_v59 = vpop.permute.xlu1 %1512 }
0x1d98   :  { %v3113_v8 = vmul.f32 %v2604_v9, %v1513_v59 }
0x1d9a   :  { %v1537_v60 = vrot.slane %v3113_v8, 4 }
0x1d9c   :  { %1538 = vrot.lane.b32.xlu0 %v1537_v60, %s2767_s17 }
0x1e0e   :  { %v1539_v61 = vpop.permute.xlu0 %1538 }
0x1e0f   :  { %2461 = vmatmul.mubr.msk.f32.vlgmr.msra.gmra.mxu1 %vm197_vm4, %v1539_v61 }
0x1e10   :  { %2475 = vmatpush3.msra.mxu1 %v3017_v51  ;;  %2482 = vmatprep.mubr.msk.f32.mxu1 %vm2765_vm0, %v2764_v1 }
0x1e11   :  { %2476 = vmatprep.subr.mxu1 %v2764_v1 }
0x1e12   :  { %2477 = vmatpush3.msra.mxu1 %v3023_v52 }
0x1e13   :  { %2478 = vmatprep.subr.mxu1 %v2764_v1 }
0x1e14   :  { %2479 = vmatpush3.msra.mxu1 %v3026_v53 }
0x1e15   :  { %2480 = vmatprep.subr.mxu1 %v2764_v1 }
0x1e16   :  { %2481 = vmatpush3.msra.mxu1 %v3035_v54 }
0x1e17   :  { %2496 = vmatprep.subr.mxu1 %v2764_v1 }
0x1ecf   :  { %v1608_v62 = vpop.f32.mrf.mxu1 }
0x1ed0   :  { %v1613_v0 = vrot.slane %v1608_v62, 2 }
0x1ed1   :  { %v2462_v4 = vpop.f32.mrf.mxu1 }
0x1ed2   :  { %v1615_v5 = vadd.f32 %v1613_v0, %v3069_v2 }
0x1ed4   :  { %2607 = vtanh.f32 %v1615_v5  ;;  %v2215_v12 = vmul.f32 -1.442695, %v1615_v5 }
0x1ed6   :  { %2609 = vpow2.f32 %v2215_v12 }
0x1ee1   :  { %v2608_v10 = vpop.eup %2607 }
0x1ee2   :  { %1628 = vrot.lane.b32.xlu1 %v2608_v10, %s2766_s0 }
0x1ee3   :  { %v2610_v14 = vpop.eup %2609 }
0x1ee4   :  { %v1619_v15 = vadd.f32 1.0, %v2610_v14 }
0x1ee6   :  { %2611 = vrcp.f32 %v1619_v15 }
0x1ef3   :  { %v2612_v16 = vpop.eup %2611 }
0x1ef4   :  { %v1626_v20 = vmul.f32 %v2612_v16, %v1624_v19 }
0x1f54   :  { %v1629_v17 = vpop.permute.xlu1 %1628 }
0x1f55   :  { %v1631_v18 = vmul.f32 %v2612_v16, %v1629_v17 }
0x1f57   :  { %1633 = vrot.lane.b32.xlu0 %v1631_v18, %s2767_s17 }
0x1fc9   :  { %v1634_v21 = vpop.permute.xlu0 %1633 }
0x1fca   :  { %v1636_v22 = vadd.f32 %v1634_v21, %v1626_v20 }
0x1fcc   :  { %2613 = vtanh.f32 %v1636_v22  ;;  %v1748_v38 = vrot.slane %v1636_v22, 6 }
0x1fd9   :  { %v2614_v2 = vpop.eup %2613 }
0x1fda   :  { %1639 = vrot.lane.b32.xlu1 %v2614_v2, %s2766_s0 }
0x204c   :  { %v1640_v24 = vpop.permute.xlu1 %1639 }
0x204d   :  { %v3132_v25 = vmul.f32 %v2612_v16, %v1640_v24 }
0x204f   :  { %v1664_v26 = vrot.slane %v3132_v25, 6 }
0x2051   :  { %1665 = vrot.lane.b32.xlu0 %v1664_v26, %s2767_s17 }
0x20c3   :  { %v1666_v27 = vpop.permute.xlu0 %1665 }
0x20c4   :  { %2472 = vmatmul.mubr.msk.f32.vlgmr.msra.gmra.mxu0 %vm197_vm4, %v1666_v27 }
0x20c5   :  { %2486 = vmatpush3.msra.mxu0 %v3017_v51  ;;  %2493 = vmatprep.mubr.msk.f32.mxu0 %vm2765_vm0, %v2764_v1 }
0x20c6   :  { %2487 = vmatprep.subr.mxu0 %v2764_v1 }
0x20c7   :  { %2488 = vmatpush3.msra.mxu0 %v3023_v52 }
0x20c8   :  { %2489 = vmatprep.subr.mxu0 %v2764_v1 }
0x20c9   :  { %2490 = vmatpush3.msra.mxu0 %v3026_v53 }
0x20ca   :  { %2491 = vmatprep.subr.mxu0 %v2764_v1 }
0x20cb   :  { %2492 = vmatpush3.msra.mxu0 %v3035_v54 }
0x2184   :  { %v1735_v28 = vpop.f32.mrf.mxu0 }
0x2185   :  { %v1739_v13 = vadd.f32 %v1735_v28, %v3067_v63 }
0x2186   :  { %v2473_v29 = vpop.f32.mrf.mxu0 }
0x2187   :  { %2615 = vtanh.f32 %v1739_v13  ;;  %v2217_v32 = vmul.f32 -1.442695, %v1739_v13 }
0x2189   :  { %2617 = vpow2.f32 %v2217_v32 }
0x2194   :  { %v2616_v31 = vpop.eup %2615 }
0x2195   :  { %1752 = vrot.lane.b32.xlu1 %v2616_v31, %s2766_s0  ;;  %v1266_v31 = vlaneseq }
0x2196   :  { %v2618_v33 = vpop.eup %2617 }
0x2197   :  { %v1743_v34 = vadd.f32 1.0, %v2618_v33  ;;  %v1267_v32 = vshrl.u32 %v1266_v31, 7 }
0x2199   :  { %2619 = vrcp.f32 %v1743_v34  ;;  %v1391_v33 = vsub.s32 1, %v1267_v32  ;;  %v96_v34 = vld [vmem:[%s3222_s7] sm:$0xff] }
0x21a6   :  { %v2620_v35 = vpop.eup %2619 }
0x21a7   :  { %v1750_v39 = vmul.f32 %v2620_v35, %v1748_v38 }
0x2207   :  { %v1753_v36 = vpop.permute.xlu1 %1752 }
0x2208   :  { %v1755_v37 = vmul.f32 %v2620_v35, %v1753_v36  ;;  %v1392_v36 = vrot.slane %v96_v34, %v1391_v33 }
0x220a   :  { %1757 = vrot.lane.b32.xlu0 %v1755_v37, %s2767_s17  ;;  %v1518_v37 = vsub.s32 2, %v1267_v32 }
0x220c   :  { %v1519_v38 = vrot.slane %v96_v34, %v1518_v37 }
0x227c   :  { %v1758_v40 = vpop.permute.xlu0 %1757 }
0x227d   :  { %v1760_v41 = vadd.f32 %v1758_v40, %v1750_v39  ;;  %v1769_v39 = vsub.s32 4, %v1267_v32 }
0x227f   :  { %2621 = vtanh.f32 %v1760_v41  ;;  %v1770_v40 = vrot.slane %v96_v34, %v1769_v39 }
0x228c   :  { %v2622_v11 = vpop.eup %2621 }
0x228d   :  { %1763 = vrot.lane.b32.xlu1 %v2622_v11, %s2766_s0 }
0x22ff   :  { %v1764_v43 = vpop.permute.xlu1 %1763 }
0x2300   :  { %v3150_v44 = vmul.f32 %v2620_v35, %v1764_v43 }
0x2302   :  { %1785 = vrot.lane.b32.xlu0 %v3150_v44, %s2767_s17 }
0x2374   :  { %v1786_v45 = vpop.permute.xlu0 %1785 }
0x2375   :  { %2483 = vmatmul.mubr.msk.f32.vlgmr.msra.gmra.mxu1 %vm197_vm4, %v1786_v45 }
0x2376   :  { %2497 = vmatpush3.msra.mxu1 %v3017_v51  ;;  %2504 = vmatprep.mubr.msk.f32.mxu1 %vm2765_vm0, %v2764_v1 }
0x2377   :  { %2498 = vmatprep.subr.mxu1 %v2764_v1 }
0x2378   :  { %2499 = vmatpush3.msra.mxu1 %v3023_v52 }
0x2379   :  { %2500 = vmatprep.subr.mxu1 %v2764_v1 }
0x237a   :  { %2501 = vmatpush3.msra.mxu1 %v3026_v53 }
0x237b   :  { %2502 = vmatprep.subr.mxu1 %v2764_v1  ;;  %v1871_v1 = vrot.slane %v1760_v41, 6 }
0x237c   :  { %2503 = vmatpush3.msra.mxu1 %v3035_v54 }
0x2435   :  { %v1855_v46 = vpop.f32.mrf.mxu1 }
0x2436   :  { %v1860_v47 = vrot.slane %v1855_v46, 6  ;;  %v1268_v46 = vsub.s32 0, %v1267_v32 }
0x2437   :  { %v2484_v48 = vpop.f32.mrf.mxu1 }
0x2438   :  { %v1862_v51 = vadd.f32 %v1860_v47, %v3067_v63 }
0x243a   :  { %2623 = vtanh.f32 %v1862_v51  ;;  %v2219_v49 = vmul.f32 -1.442695, %v1862_v51 }
0x243c   :  { %2625 = vpow2.f32 %v2219_v49  ;;  %v1645_v49 = vsub.s32 3, %v1267_v32 }
0x2447   :  { %v2624_v30 = vpop.eup %2623 }
0x2448   :  { %1875 = vrot.lane.b32.xlu1 %v2624_v30, %s2766_s0  ;;  %v1269_v30 = vrot.slane %v96_v34, %v1268_v46 }
0x2449   :  { %v2626_v52 = vpop.eup %2625 }
0x244a   :  { %v1866_v50 = vadd.f32 1.0, %v2626_v52  ;;  %v2146_v52 = vsub.s32 7, %v1267_v32 }
0x244c   :  { %2627 = vrcp.f32 %v1866_v50  ;;  %v2147_v50 = vrot.slane %v96_v34, %v2146_v52  ;;  %v2224_v52 = vld [vmem:[#allocation3] ss:$0 sm:$0xff] }
0x2459   :  { %v2628_v9 = vpop.eup %2627 }
0x245a   :  { %v1873_v54 = vmul.f32 %v2628_v9, %v1871_v1 }
0x24ba   :  { %v1876_v53 = vpop.permute.xlu1 %1875 }
0x24bb   :  { %v1878_v3 = vmul.f32 %v2628_v9, %v1876_v53  ;;  %v1892_v53 = vsub.s32 5, %v1267_v32 }
0x24bd   :  { %1880 = vrot.lane.b32.xlu0 %v1878_v3, %s2767_s17  ;;  %v1893_v3 = vrot.slane %v96_v34, %v1892_v53 }
0x252f   :  { %v1881_v55 = vpop.permute.xlu0 %1880 }
0x2530   :  { %v1883_v6 = vadd.f32 %v1881_v55, %v1873_v54 }
0x2532   :  { %2629 = vtanh.f32 %v1883_v6  ;;  %v1998_v17 = vrot.slane %v1883_v6, 6 }
0x253f   :  { %v2630_v56 = vpop.eup %2629 }
0x2540   :  { %1886 = vrot.lane.b32.xlu1 %v2630_v56, %s2766_s0 }
0x25b2   :  { %v1887_v57 = vpop.permute.xlu1 %1886 }
0x25b3   :  { %v3168_v7 = vmul.f32 %v2628_v9, %v1887_v57  ;;  %v1646_v9 = vrot.slane %v96_v34, %v1645_v49 }
0x25b5   :  { %v1911_v58 = vrot.slane %v3168_v7, 2 }
0x25b7   :  { %1912 = vrot.lane.b32.xlu0 %v1911_v58, %s2767_s17 }
0x2629   :  { %v1913_v59 = vpop.permute.xlu0 %1912 }
0x262a   :  { %2494 = vmatmul.mubr.msk.f32.vlgmr.msra.gmra.mxu0 %vm197_vm4, %v1913_v59 }
0x26ea   :  { %v1982_v60 = vpop.f32.mrf.mxu0 }
0x26eb   :  { %v1987_v61 = vrot.slane %v1982_v60, 4 }
0x26ec   :  { %v2495_v62 = vpop.f32.mrf.mxu0 }
0x26ed   :  { %v1989_v0 = vadd.f32 %v1987_v61, %v3067_v63 }
0x26ef   :  { %2631 = vtanh.f32 %v1989_v0  ;;  %v2221_v5 = vmul.f32 -1.442695, %v1989_v0 }
0x26f1   :  { %2633 = vpow2.f32 %v2221_v5 }
0x26fc   :  { %v2632_v4 = vpop.eup %2631 }
0x26fd   :  { %2002 = vrot.lane.b32.xlu1 %v2632_v4, %s2766_s0 }
0x26fe   :  { %v2634_v10 = vpop.eup %2633 }
0x26ff   :  { %v1993_v12 = vadd.f32 1.0, %v2634_v10 }
0x2701   :  { %2635 = vrcp.f32 %v1993_v12 }
0x270e   :  { %v2636_v14 = vpop.eup %2635 }
0x270f   :  { %v2000_v18 = vmul.f32 %v2636_v14, %v1998_v17 }
0x276f   :  { %v2003_v15 = vpop.permute.xlu1 %2002 }
0x2770   :  { %v2005_v16 = vmul.f32 %v2636_v14, %v2003_v15 }
0x2772   :  { %2007 = vrot.lane.b32.xlu0 %v2005_v16, %s2767_s17 }
0x27e4   :  { %v2008_v19 = vpop.permute.xlu0 %2007 }
0x27e5   :  { %v2010_v20 = vadd.f32 %v2008_v19, %v2000_v18 }
0x27e7   :  { %2637 = vtanh.f32 %v2010_v20  ;;  %v2125_v1 = vrot.slane %v2010_v20, 6 }
0x27f4   :  { %v2638_v21 = vpop.eup %2637 }
0x27f5   :  { %2013 = vrot.lane.b32.xlu1 %v2638_v21, %s2766_s0 }
0x2867   :  { %v2014_v22 = vpop.permute.xlu1 %2013 }
0x2868   :  { %v3177_v2 = vmul.f32 %v2636_v14, %v2014_v22 }
0x286a   :  { %v2038_v24 = vrot.slane %v3177_v2, 4 }
0x286c   :  { %2039 = vrot.lane.b32.xlu0 %v2038_v24, %s2767_s17 }
0x28de   :  { %v2040_v26 = vpop.permute.xlu0 %2039 }
0x28df   :  { %2505 = vmatmul.mubr.msk.f32.vlgmr.msra.gmra.mxu1 %vm197_vm4, %v2040_v26 }
0x299f   :  { %v2109_v27 = vpop.f32.mrf.mxu1 }
0x29a0   :  { %v2114_v28 = vrot.slane %v2109_v27, 2 }
0x29a1   :  { %v2506_v13 = vpop.f32.mrf.mxu1 }
0x29a2   :  { %v2116_v29 = vadd.f32 %v2114_v28, %v3067_v63  ;;  %v2019_v63 = vsub.s32 6, %v1267_v32 }
0x29a4   :  { %2639 = vtanh.f32 %v2116_v29  ;;  %v2020_v41 = vrot.slane %v96_v34, %v2019_v63  ;;  %v2223_v11 = vmul.f32 -1.442695, %v2116_v29 }
0x29a6   :  { %2641 = vpow2.f32 %v2223_v11 }
0x29b1   :  { %v2640_v35 = vpop.eup %2639 }
0x29b2   :  { %2129 = vrot.lane.b32.xlu1 %v2640_v35, %s2766_s0 }
0x29b3   :  { %v2642_v43 = vpop.eup %2641 }
0x29b4   :  { %v2120_v45 = vadd.f32 1.0, %v2642_v43 }
0x29b6   :  { %1394 = vrot.lane.b32.xlu1 %v1392_v36, %s2768_s25  ;;  %2643 = vrcp.f32 %v2120_v45 }
0x29ba   :  { %1521 = vrot.lane.b32.xlu1 %v1519_v38, %s2768_s25 }
0x29be   :  { %1772 = vrot.lane.b32.xlu1 %v1770_v40, %s2768_s25 }
0x29c2   :  { %2022 = vrot.lane.b32.xlu1 %v2020_v41, %s2768_s25 }
0x29c3   :  { %v2644_v47 = vpop.eup %2643 }
0x29c4   :  { %v2127_v54 = vmul.f32 %v2644_v47, %v2125_v1 }
0x29c6   :  { %2149 = vrot.lane.b32.xlu1 %v2147_v50, %s2768_s25 }
0x2a24   :  { %v2130_v48 = vpop.permute.xlu1 %2129 }
0x2a25   :  { %v2132_v51 = vmul.f32 %v2644_v47, %v2130_v48 }
0x2a27   :  { %2134 = vrot.lane.b32.xlu0 %v2132_v51, %s2767_s17 }
0x2a28   :  { %v1395_v59 = vpop.permute.xlu1 %1394 }
0x2a29   :  { %v1397_v60 = vmul.f32 %v1395_v59, %v3094_v42 }
0x2a2b   :  { %1271 = vrot.lane.b32.xlu0 %v1269_v30, %s2768_s25 }
0x2a2c   :  { %v1522_v5 = vpop.permute.xlu1 %1521 }
0x2a2d   :  { %v1524_v15 = vmul.f32 %v1522_v5, %v3113_v8 }
0x2a2f   :  { %1648 = vrot.lane.b32.xlu0 %v1646_v9, %s2768_s25 }
0x2a30   :  { %v1773_v14 = vpop.permute.xlu1 %1772 }
0x2a31   :  { %v1775_v42 = vmul.f32 %v1773_v14, %v3150_v44 }
0x2a33   :  { %1895 = vrot.lane.b32.xlu0 %v1893_v3, %s2768_s25 }
0x2a34   :  { %v2023_v16 = vpop.permute.xlu1 %2022 }
0x2a35   :  { %v2025_v8 = vmul.f32 %v2023_v16, %v3177_v2 }
0x2a38   :  { %v2150_v19 = vpop.permute.xlu1 %2149 }
0x2a99   :  { %v2135_v55 = vpop.permute.xlu0 %2134 }
0x2a9a   :  { %v2137_v6 = vadd.f32 %v2135_v55, %v2127_v54 }
0x2a9c   :  { %2645 = vtanh.f32 %v2137_v6 }
0x2a9d   :  { %v1272_v56 = vpop.permute.xlu0 %1271 }
0x2a9e   :  { %v1274_v57 = vmul.f32 %v1272_v56, %v3075_v23 }
0x2aa0   :  { %1276 = vrot.lane.b32.xlu0 %v1274_v57, %s2767_s17 }
0x2aa1   :  { %v1649_v61 = vpop.permute.xlu0 %1648 }
0x2aa2   :  { %v1651_v21 = vmul.f32 %v1649_v61, %v3132_v25 }
0x2aa5   :  { %v1896_v62 = vpop.permute.xlu0 %1895 }
0x2aa6   :  { %v1898_v17 = vmul.f32 %v1896_v62, %v3168_v7 }
0x2aa9   :  { %v2646_v58 = vpop.eup %2645 }
0x2aaa   :  { %2140 = vrot.lane.b32.xlu0 %v2646_v58, %s2766_s0 }
0x2aae   :  { %1399 = vrot.lane.b32.xlu0 %v1397_v60, %s2767_s17 }
0x2b12   :  { %v1277_v0 = vpop.permute.xlu0 %1276 }
0x2b13   :  { %v1279_v4 = vsel %vm300_vm3, %v1277_v0, 0.0 }
0x2b14   :  { %1280 = vadd.xlane.f32.xlu1 %v1279_v4 }
0x2b1c   :  { %v2141_v10 = vpop.permute.xlu0 %2140 }
0x2b1d   :  { %v2143_v18 = vmul.f32 %v2644_v47, %v2141_v10 }
0x2b1f   :  { %v2152_v20 = vmul.f32 %v2150_v19, %v2143_v18 }
0x2b20   :  { %v1400_v12 = vpop.permute.xlu0 %1399 }
0x2b21   :  { %v1402_v23 = vsel %vm409_vm5, %v1400_v12, 0.0 }
0x2b22   :  { %1403 = vadd.xlane.f32.xlu0 %v1402_v23 }
0x2b25   :  { %1526 = vrot.lane.b32.xlu1 %v1524_v15, %s2767_s17 }
0x2b29   :  { %1777 = vrot.lane.b32.xlu1 %v1775_v42, %s2767_s17 }
0x2b2d   :  { %1900 = vrot.lane.b32.xlu1 %v1898_v17, %s2767_s17 }
0x2b31   :  { %2154 = vrot.lane.b32.xlu1 %v2152_v20, %s2767_s17 }
0x2b38   :  { %1653 = vrot.lane.b32.xlu0 %v1651_v21, %s2767_s17 }
0x2b3c   :  { %2027 = vrot.lane.b32.xlu0 %v2025_v8, %s2767_s17 }
0x2b9d   :  { %v1281_v44 = vpop.xlane.xlu1 %1280 }
0x2ba1   :  { %v1527_v22 = vpop.permute.xlu1 %1526 }
0x2ba2   :  { %v1529_v24 = vsel %vm521_vm7, %v1527_v22, 0.0 }
0x2ba3   :  { %1530 = vadd.xlane.f32.xlu0 %v1529_v24 }
0x2ba5   :  { %v1778_v7 = vpop.permute.xlu1 %1777 }
0x2ba6   :  { %v1780_v26 = vsel %vm300_vm3, %v1778_v7, 0.0 }
0x2ba7   :  { %1781 = vadd.xlane.f32.xlu0 %v1780_v26 }
0x2ba9   :  { %v1901_v27 = vpop.permute.xlu1 %1900 }
0x2baa   :  { %v1903_v28 = vsel %vm409_vm5, %v1901_v27, 0.0 }
0x2bab   :  { %1904 = vadd.xlane.f32.xlu0 %v1903_v28  ;;  %v1404_v25 = vpop.xlane.xlu0 %1403 }
0x2bac   :  { %v1406_v13 = vrot.slane %v1404_v25, 2 }
0x2bad   :  { %v2155_v29 = vpop.permute.xlu1 %2154 }
0x2bae   :  { %v1408_v31 = vadd.f32 %v1406_v13, %v1281_v44  ;;  %v2157_v2 = vsel %vm633_vm6, %v2155_v29, 0.0 }
0x2baf   :  { %2158 = vadd.xlane.f32.xlu0 %v2157_v2  ;;  %v1654_v32 = vpop.permute.xlu0 %1653 }
0x2bb0   :  { %v1656_v33 = vsel %vm633_vm6, %v1654_v32, 0.0 }
0x2bb1   :  { %1657 = vadd.xlane.f32.xlu1 %v1656_v33 }
0x2bb3   :  { %v2028_v34 = vpop.permute.xlu0 %2027 }
0x2bb4   :  { %v2030_v35 = vsel %vm521_vm7, %v2028_v34, 0.0 }
0x2bb5   :  { %2031 = vadd.xlane.f32.xlu1 %v2030_v35 }
0x2c2c   :  { %v1531_v36 = vpop.xlane.xlu0 %1530 }
0x2c2d   :  { %v1533_v38 = vrot.slane %v1531_v36, 4 }
0x2c2f   :  { %v1535_v63 = vadd.f32 %v1533_v38, %v1408_v31 }
0x2c30   :  { %v1782_v37 = vpop.xlane.xlu0 %1781 }
0x2c34   :  { %v1905_v39 = vpop.xlane.xlu0 %1904 }
0x2c35   :  { %v1907_v45 = vrot.slane %v1905_v39, 2 }
0x2c38   :  { %v2159_v47 = vpop.xlane.xlu0 %2158 }
0x2c39   :  { %v2161_v30 = vrot.slane %v2159_v47, 6 }
0x2c3a   :  { %v1658_v40 = vpop.xlane.xlu1 %1657 }
0x2c3b   :  { %v1660_v41 = vrot.slane %v1658_v40, 6 }
0x2c3d   :  { %v1662_v11 = vadd.f32 %v1660_v41, %v1535_v63 }
0x2c3e   :  { %v2032_v43 = vpop.xlane.xlu1 %2031 }
0x2c3f   :  { %v1783_v46 = vadd.f32 %v1782_v37, %v1662_v11  ;;  %v2034_v51 = vrot.slane %v2032_v43, 4 }
0x2c41   :  { %v1909_v48 = vadd.f32 %v1907_v45, %v1783_v46 }
0x2c43   :  { %v2036_v49 = vadd.f32 %v2034_v51, %v1909_v48 }
0x2c45   :  { %v2163_v50 = vadd.f32 %v2161_v30, %v2036_v49 }
0x2c47   :  { %v2171_v9 = vadd.f32 %v2224_v52, %v2163_v50 }
0x2c49   :  { %v2225_v53 = vmul.f32 -1.442695, %v2171_v9 }
0x2c4b   :  { %2647 = vpow2.f32 %v2225_v53 }
0x2c58   :  { %v2648_v3 = vpop.eup %2647 }
0x2c59   :  { %v2175_v1 = vadd.f32 1.0, %v2648_v3 }
0x2c5b   :  { %2649 = vrcp.f32 %v2175_v1 }
0x2c68   :  { %v2650_v54 = vpop.eup %2649 }
0x2c69   :  { %2179 = vst.msk [vmem:[%s3224_s9] sm:$0x3] %vm2178_vm8, %v2650_v54 }
0x2c6a   :  { %2184 = vsyncpa [#allocation5], 1 }
0x2c6b   :  { %2185 = vsyncpa [#allocation7], 1 }
0x2c6c   :  { %2186 = vsyncpa [#allocation10], 1 }

</bundles_post_ra>
